<compile_context>
chip_gen: v7x
topology: tpu7x:2x2x1
jax: 0.10.0
libtpu: 0.0.40
codegen_flags: <defaults>
</compile_context>

<pallas_src>
import functools

import jax
import jax.numpy as jnp
from jax.experimental import pallas as pl
from jax.experimental.pallas import tpu as pltpu  # noqa: F401  (TPU-specific tuning hooks)

# ----------------------------- config -----------------------------
BATCH = 2
MAX_SEQ_LEN = 8
SEQ = 8            # len_q = len_k = len_v
D_MODEL = 32
D_INNER = 64
N_HEAD = 4
D_K = 8
D_V = 8
LN_EPS = 1e-6
MASK_FILL = -1e9
_HI = jax.lax.Precision.HIGHEST


# ----------------------------- shared math helpers -----------------------------

def _layer_norm(y, gamma, beta):
    mu = jnp.mean(y, axis=-1, keepdims=True)
    var = jnp.mean((y - mu) ** 2, axis=-1, keepdims=True)
    return (y - mu) * jax.lax.rsqrt(var + LN_EPS) * gamma + beta


def _softmax_lastdim(s):
    # stable softmax; exact divide so returned attention rows sum to 1
    s = s - jnp.max(s, axis=-1, keepdims=True)
    e = jnp.exp(s)
    return e / jnp.sum(e, axis=-1, keepdims=True)


# ----------------------------- fused kernel -----------------------------

def _decoder_layer_kernel(
    x_ref, bias_ref, w_ref, w2_ref, vec_ref,
    out_ref, slf_attn_ref, enc_attn_ref,
    *, b, lq, lk, h, dk, dm, d_inner):

    x = x_ref[0]                                   # (b*lq, dm)  decoder input
    e = x_ref[1]                                   # (b*lk, dm)  encoder output

    # static lane offsets into the packed weight (hot matmul RHS slices are 128-aligned)
    o1 = h * dm                                    # end of self-attn fused (Wv@fc) stack
    o2 = o1 + h * dm + h * dk                      # end of enc-dec fused [Wv@fc | Wk] stack
    o3 = o2 + h * dk                               # end of enc-dec Wq (1/sqrt(dk) folded in)
    w_slf = w_ref[:, 0:o1]                         # (dm, h*dm)
    w_enc_e = w_ref[:, o1:o2]                      # (dm, h*dm + h*dk)
    w_enc_q = w_ref[:, o2:o3]                      # (dm, h*dk)
    w_ffn1 = w_ref[:, o3:o3 + d_inner]             # (dm, d_inner)

    # ================= self-attention (attn_type='random') =================
    # (w_qs(q) is never used in the PyTorch 'random' path -> skipped.)
    # Wv and fc pre-fused host-side: z_slf[:, hh*dm:(hh+1)*dm] == V_h @ fc_h.
    z_slf = jnp.dot(x, w_slf, preferred_element_type=jnp.float32)          # (b*lq, h*dm)

    # masked softmax for ALL (head, batch) at once; head-major layout (h, b, lq, lk)
    scores = bias_ref[0:h * b].reshape(h, b, lq, lk) + bias_ref[h * b:h * b + b][None]
    p_slf = _softmax_lastdim(scores)
    slf_attn_ref[...] = p_slf                       # single contiguous store

    y = x                                           # residual accumulator (b*lq, dm)
    for hh in range(h):                             # trace-time unroll (h=4)
        z_h = z_slf[:, hh * dm:(hh + 1) * dm].reshape(b, lq, dm)
        y = y + jnp.einsum('bqk,bkd->bqd', p_slf[hh], z_h,
                           preferred_element_type=jnp.float32).reshape(b * lq, dm)
    dec1 = _layer_norm(y, vec_ref[2:3, 0:dm], vec_ref[3:4, 0:dm])

    # ================= enc-dec attention (attn_type='vanilla') =================
    # one matmul on the encoder stream yields [per-head V@fc | K]; splits are 128-aligned
    e_all = jnp.dot(e, w_enc_e, preferred_element_type=jnp.float32)        # (b*lk, h*dm+h*dk)
    z_enc = e_all[:, 0:h * dm]                                             # (b*lk, h*dm)
    k_all = e_all[:, h * dm:h * dm + h * dk].reshape(b, lk, h * dk)        # (b, lk, h*dk)
    q_all = jnp.dot(dec1, w_enc_q,
                    preferred_element_type=jnp.float32).reshape(b, lq, h * dk)

    # per-head QK^T (tiny MXU ops), then ONE masked softmax + ONE store for all heads
    s_heads = [jnp.einsum('bqd,bkd->bqk',
                          q_all[:, :, hh * dk:(hh + 1) * dk],
                          k_all[:, :, hh * dk:(hh + 1) * dk],
                          preferred_element_type=jnp.float32) for hh in range(h)]
    s_enc = (jnp.concatenate(s_heads, axis=0).reshape(h, b, lq, lk)
             + bias_ref[h * b + b:h * b + 2 * b][None])
    p_enc = _softmax_lastdim(s_enc)
    enc_attn_ref[...] = p_enc                       # single contiguous store

    y2 = dec1
    for hh in range(h):
        z_h = z_enc[:, hh * dm:(hh + 1) * dm].reshape(b, lk, dm)
        y2 = y2 + jnp.einsum('bqk,bkd->bqd', p_enc[hh], z_h,
                             preferred_element_type=jnp.float32).reshape(b * lq, dm)
    dec2 = _layer_norm(y2, vec_ref[4:5, 0:dm], vec_ref[5:6, 0:dm])

    # ================= position-wise feed-forward =================
    hid = jnp.dot(dec2, w_ffn1, preferred_element_type=jnp.float32) + vec_ref[0:1, :]
    hid = jnp.maximum(hid, 0.0)
    y3 = (jnp.dot(hid, w2_ref[...], preferred_element_type=jnp.float32)
          + vec_ref[1:2, 0:dm] + dec2)
    out_ref[...] = _layer_norm(y3, vec_ref[6:7, 0:dm], vec_ref[7:8, 0:dm])


# ----------------------------- wrapper -----------------------------

def decoder_layer(params, dec_input, enc_output, slf_attn_mask, dec_enc_attn_mask):
    b, lq, dm = dec_input.shape
    lk = enc_output.shape[1]
    h, dk, dv = N_HEAD, D_K, D_V
    d_inner = params['w1'].shape[1]
    assert lq == lk, "fused kernel assumes len_q == len_k"

    # ---------- one-time host-side operand preparation / packing (5 DMAs total) ----------
    # 1) decoder / encoder activations in one operand
    x_pack = jnp.stack([dec_input.reshape(b * lq, dm),
                        enc_output.reshape(b * lk, dm)], axis=0)           # (2, b*l, dm)

    # 2) random-attn logits (head-major) + additive masks (0 keep / -1e9 masked) in one operand
    ra = params['random_attn'][:b, :, :lq, :lq]                            # (b, h, lq, lq)
    slf_add = (1.0 - slf_attn_mask) * MASK_FILL
    enc_add = (1.0 - dec_enc_attn_mask) * MASK_FILL
    bias_pack = jnp.concatenate(
        [ra.transpose(1, 0, 2, 3).reshape(h * b, lq, lk), slf_add, enc_add], axis=0)

    # 3) all d_model-row weights packed along lanes; per-head (Wv @ fc) pre-fused so the
    #    kernel never does dv=8-wide lane slices or per-head fc matmuls
    def fuse_v_fc(w_vs, fc):   # -> (dm, h*dm), head-major lane blocks
        return jnp.einsum('dhe,hem->dhm',
                          w_vs.reshape(dm, h, dv), fc.reshape(h, dv, dm),
                          precision=_HI).reshape(dm, h * dm)

    w_slf_stack = fuse_v_fc(params['slf_w_vs'], params['slf_fc'])          # (32, 128)
    w_enc_e = jnp.concatenate(
        [fuse_v_fc(params['enc_w_vs'], params['enc_fc']), params['enc_w_ks']], axis=1)  # (32, 160)
    w_enc_q = params['enc_w_qs'] / (dk ** 0.5)                             # temperature folded in
    w_pack = jnp.concatenate([w_slf_stack, w_enc_e, w_enc_q, params['w1']], axis=1)     # (32, 384)

    # 4) every bias / layer-norm vector packed into one (8, 64) operand
    def row64(v):
        return jnp.pad(v, ((0, 0), (0, 64 - v.shape[1])))
    vec_pack = jnp.concatenate(
        [row64(params['b1']), row64(params['b2']),
         row64(params['slf_ln_g']), row64(params['slf_ln_b']),
         row64(params['enc_ln_g']), row64(params['enc_ln_b']),
         row64(params['ffn_ln_g']), row64(params['ffn_ln_b'])], axis=0)    # (8, 64)

    kern = functools.partial(_decoder_layer_kernel,
                             b=b, lq=lq, lk=lk, h=h, dk=dk, dm=dm, d_inner=d_inner)

    flops = 2 * ((b * lq) * dm * (h * dm)             # self-attn fused V@fc stack
                 + h * b * lq * lk * dm               # self-attn P @ Z
                 + (b * lk) * dm * (h * dm + h * dk)  # enc-dec fused [V@fc | K]
                 + (b * lq) * dm * (h * dk)           # enc-dec Q projection
                 + h * b * lq * dk * lk               # enc-dec QK^T
                 + h * b * lq * lk * dm               # enc-dec P @ Z
                 + (b * lq) * dm * d_inner * 2)       # FFN
    bytes_accessed = 4 * (x_pack.size + bias_pack.size + w_pack.size
                          + params['w2'].size + vec_pack.size
                          + b * lq * dm + 2 * h * b * lq * lk)

    out, slf_attn_hb, enc_attn_hb = pl.pallas_call(
        kern,
        out_shape=(jax.ShapeDtypeStruct((b * lq, dm), jnp.float32),
                   jax.ShapeDtypeStruct((h, b, lq, lk), jnp.float32),
                   jax.ShapeDtypeStruct((h, b, lq, lk), jnp.float32)),
        cost_estimate=pl.CostEstimate(flops=flops,
                                      transcendentals=2 * h * b * lq * lk + 3 * b * lq,
                                      bytes_accessed=bytes_accessed),
        # No grid: the whole problem (<100 KiB) is VMEM-resident on v5e/v6e (128 MiB)
        # and v7x (64 MiB). If shapes grow, re-derive tiling and (v7x only) add a
        # "parallel" batch grid axis to engage the second TensorCore.
    )(x_pack, bias_pack, w_pack, params['w2'], vec_pack)

    # head-major -> (b, h, lq, lk) outside the kernel: pure layout plumbing, tiny arrays
    return (out.reshape(b, lq, dm),
            slf_attn_hb.transpose(1, 0, 2, 3),
            enc_attn_hb.transpose(1, 0, 2, 3))


# ----------------------------- pure-JAX reference (PyTorch semantics) -----------------------------

def _reference_decoder_layer(params, dec_input, enc_output, slf_mask, enc_mask):
    b, lq, dm = dec_input.shape
    lk = enc_output.shape[1]
    h, dk, dv = N_HEAD, D_K, D_V
    sm = lambda x: jax.nn.softmax(x, axis=-1)

    x2 = dec_input.reshape(b * lq, dm)
    v = jnp.dot(x2, params['slf_w_vs'], precision=_HI).reshape(b, lq, h, dv).transpose(0, 2, 1, 3)
    ra = params['random_attn'][:b, :, :lq, :lq]
    ra = jnp.where(slf_mask[:, None, :, :] == 0, MASK_FILL, ra)
    attn1 = sm(ra)
    o = jnp.einsum('bhqk,bhkd->bhqd', attn1, v,
                   precision=_HI).transpose(0, 2, 1, 3).reshape(b * lq, h * dv)
    d1 = _layer_norm(jnp.dot(o, params['slf_fc'], precision=_HI) + x2,
                     params['slf_ln_g'], params['slf_ln_b'])

    e2 = enc_output.reshape(b * lk, dm)
    q = jnp.dot(d1, params['enc_w_qs'], precision=_HI).reshape(b, lq, h, dk).transpose(0, 2, 1, 3)
    k = jnp.dot(e2, params['enc_w_ks'], precision=_HI).reshape(b, lk, h, dk).transpose(0, 2, 1, 3)
    v2 = jnp.dot(e2, params['enc_w_vs'], precision=_HI).reshape(b, lk, h, dv).transpose(0, 2, 1, 3)
    s = jnp.einsum('bhqd,bhkd->bhqk', q / (dk ** 0.5), k, precision=_HI)
    s = jnp.where(enc_mask[:, None, :, :] == 0, MASK_FILL, s)
    attn2 = sm(s)
    o2 = jnp.einsum('bhqk,bhkd->bhqd', attn2, v2,
                    precision=_HI).transpose(0, 2, 1, 3).reshape(b * lq, h * dv)
    d2 = _layer_norm(jnp.dot(o2, params['enc_fc'], precision=_HI) + d1,
                     params['enc_ln_g'], params['enc_ln_b'])

    hid = jnp.maximum(jnp.dot(d2, params['w1'], precision=_HI) + params['b1'], 0.0)
    d3 = _layer_norm(jnp.dot(hid, params['w2'], precision=_HI) + params['b2'] + d2,
                     params['ffn_ln_g'], params['ffn_ln_b'])
    return d3.reshape(b, lq, dm), attn1, attn2


# ----------------------------- main -----------------------------

if __name__ == "__main__":
    key = jax.random.PRNGKey(0)
    ks = jax.random.split(key, 16)

    def nrm(k, shape, scale=0.1):
        return jax.random.normal(k, shape, dtype=jnp.float32) * scale

    params = dict(
        # self-attention (random); the module's w_qs output is unused in this path
        slf_w_vs=nrm(ks[0], (D_MODEL, N_HEAD * D_V)),
        random_attn=jax.random.normal(ks[1], (BATCH, N_HEAD, MAX_SEQ_LEN, MAX_SEQ_LEN),
                                      dtype=jnp.float32),
        slf_fc=nrm(ks[2], (N_HEAD * D_V, D_MODEL)),
        slf_ln_g=jnp.ones((1, D_MODEL), jnp.float32),
        slf_ln_b=jnp.zeros((1, D_MODEL), jnp.float32),
        # enc-dec attention (vanilla)
        enc_w_qs=nrm(ks[3], (D_MODEL, N_HEAD * D_K)),
        enc_w_ks=nrm(ks[4], (D_MODEL, N_HEAD * D_K)),
        enc_w_vs=nrm(ks[5], (D_MODEL, N_HEAD * D_V)),
        enc_fc=nrm(ks[6], (N_HEAD * D_V, D_MODEL)),
        enc_ln_g=jnp.ones((1, D_MODEL), jnp.float32),
        enc_ln_b=jnp.zeros((1, D_MODEL), jnp.float32),
        # position-wise FFN
        w1=nrm(ks[7], (D_MODEL, D_INNER)),
        b1=nrm(ks[8], (1, D_INNER), 0.01),
        w2=nrm(ks[9], (D_INNER, D_MODEL)),
        b2=nrm(ks[10], (1, D_MODEL), 0.01),
        ffn_ln_g=jnp.ones((1, D_MODEL), jnp.float32),
        ffn_ln_b=jnp.zeros((1, D_MODEL), jnp.float32),
    )

    dec_input = jax.random.normal(ks[11], (BATCH, SEQ, D_MODEL), dtype=jnp.float32)
    enc_output = jax.random.normal(ks[12], (BATCH, SEQ, D_MODEL), dtype=jnp.float32)
    # causal self-attention mask, full enc-dec mask (1 = attend, 0 = masked)
    slf_attn_mask = jnp.broadcast_to(
        jnp.tril(jnp.ones((SEQ, SEQ), jnp.float32))[None], (BATCH, SEQ, SEQ))
    dec_enc_attn_mask = jnp.ones((BATCH, SEQ, SEQ), jnp.float32)

    run = jax.jit(decoder_layer)
    dec_output, dec_slf_attn, dec_enc_attn = run(
        params, dec_input, enc_output, slf_attn_mask, dec_enc_attn_mask)
    jax.block_until_ready((dec_output, dec_slf_attn, dec_enc_attn))

    assert dec_output.shape == (BATCH, SEQ, D_MODEL)
    assert dec_slf_attn.shape == (BATCH, N_HEAD, SEQ, SEQ)
    assert dec_enc_attn.shape == (BATCH, N_HEAD, SEQ, SEQ)

    # correctness check against a pure-JAX reference with exact PyTorch semantics
    ref_out, ref_a1, ref_a2 = _reference_decoder_layer(
        params, dec_input, enc_output, slf_attn_mask, dec_enc_attn_mask)
    tol = 1e-3  # tightened from 2e-2: f32 matmuls + exact softmax divide in the kernel
    assert float(jnp.max(jnp.abs(dec_output - ref_out))) < tol
    assert float(jnp.max(jnp.abs(dec_slf_attn - ref_a1))) < tol
    assert float(jnp.max(jnp.abs(dec_enc_attn - ref_a2))) < tol

    print("KERNEL_OK")
</pallas_src>

<mosaic_0001>
module attributes {stable_mosaic.version = 11 : i64} {
  func.func @_decoder_layer_kernel(%arg0: memref<2x16x32xf32, #tpu.memory_space<vmem>>, %arg1: memref<12x8x8xf32, #tpu.memory_space<vmem>>, %arg2: memref<32x384xf32, #tpu.memory_space<vmem>>, %arg3: memref<64x32xf32, #tpu.memory_space<vmem>>, %arg4: memref<8x64xf32, #tpu.memory_space<vmem>>, %arg5: memref<16x32xf32, #tpu.memory_space<vmem>>, %arg6: memref<4x2x8x8xf32, #tpu.memory_space<vmem>>, %arg7: memref<4x2x8x8xf32, #tpu.memory_space<vmem>>) attributes {dimension_semantics = [], scalar_prefetch = 0 : i64, scratch_operands = 0 : i64, tpu.core_type = #tpu.core_type<tc>} {
    %c0 = arith.constant 0 : index
    %c0_0 = arith.constant 0 : index
    %c0_1 = arith.constant 0 : index
    %0 = vector.load %arg0[%c0, %c0_0, %c0_1] : memref<2x16x32xf32, #tpu.memory_space<vmem>>, vector<1x16x32xf32>
    %1 = vector.shape_cast %0 : vector<1x16x32xf32> to vector<16x32xf32>
    %c1 = arith.constant 1 : index
    %c0_2 = arith.constant 0 : index
    %c0_3 = arith.constant 0 : index
    %2 = vector.load %arg0[%c1, %c0_2, %c0_3] : memref<2x16x32xf32, #tpu.memory_space<vmem>>, vector<1x16x32xf32>
    %3 = vector.shape_cast %2 : vector<1x16x32xf32> to vector<16x32xf32>
    %c0_4 = arith.constant 0 : index
    %c0_5 = arith.constant 0 : index
    %4 = vector.load %arg2[%c0_4, %c0_5] : memref<32x384xf32, #tpu.memory_space<vmem>>, vector<32x128xf32>
    %c0_6 = arith.constant 0 : index
    %c128 = arith.constant 128 : index
    %5 = vector.load %arg2[%c0_6, %c128] : memref<32x384xf32, #tpu.memory_space<vmem>>, vector<32x160xf32>
    %c0_7 = arith.constant 0 : index
    %c288 = arith.constant 288 : index
    %6 = vector.load %arg2[%c0_7, %c288] : memref<32x384xf32, #tpu.memory_space<vmem>>, vector<32x32xf32>
    %c0_8 = arith.constant 0 : index
    %c320 = arith.constant 320 : index
    %7 = vector.load %arg2[%c0_8, %c320] : memref<32x384xf32, #tpu.memory_space<vmem>>, vector<32x64xf32>
    %cst = arith.constant dense<0.000000e+00> : vector<16x128xf32>
    %8 = tpu.matmul %1, %4, %cst {dimension_numbers = #tpu.dot_dimension_numbers<[1], [0], [0], [1], [0, 0, 1, 1], [], []>} : vector<16x32xf32>, vector<32x128xf32>, vector<16x128xf32> -> vector<16x128xf32>
    %c0_9 = arith.constant 0 : index
    %c0_10 = arith.constant 0 : index
    %c0_11 = arith.constant 0 : index
    %9 = vector.load %arg1[%c0_9, %c0_10, %c0_11] : memref<12x8x8xf32, #tpu.memory_space<vmem>>, vector<8x8x8xf32>
    %10 = vector.shape_cast %9 : vector<8x8x8xf32> to vector<4x2x8x8xf32>
    %c8 = arith.constant 8 : index
    %c0_12 = arith.constant 0 : index
    %c0_13 = arith.constant 0 : index
    %11 = vector.load %arg1[%c8, %c0_12, %c0_13] : memref<12x8x8xf32, #tpu.memory_space<vmem>>, vector<2x8x8xf32>
    %12 = vector.shape_cast %11 : vector<2x8x8xf32> to vector<1x2x8x8xf32>
    %13 = vector.broadcast %12 : vector<1x2x8x8xf32> to vector<4x2x8x8xf32>
    %14 = arith.addf %10, %13 : vector<4x2x8x8xf32>
    %cst_14 = arith.constant dense<0xFF800000> : vector<4x2x8xf32>
    %15 = vector.multi_reduction <maximumf>, %14, %cst_14 [3] : vector<4x2x8x8xf32> to vector<4x2x8xf32>
    %16 = vector.shape_cast %15 : vector<4x2x8xf32> to vector<4x2x8x1xf32>
    %17 = vector.broadcast %16 : vector<4x2x8x1xf32> to vector<4x2x8x8xf32>
    %18 = arith.subf %14, %17 : vector<4x2x8x8xf32>
    %19 = math.exp %18 : vector<4x2x8x8xf32>
    %cst_15 = arith.constant dense<0.000000e+00> : vector<4x2x8xf32>
    %20 = vector.multi_reduction <add>, %19, %cst_15 [3] : vector<4x2x8x8xf32> to vector<4x2x8xf32>
    %21 = vector.shape_cast %20 : vector<4x2x8xf32> to vector<4x2x8x1xf32>
    %22 = vector.broadcast %21 : vector<4x2x8x1xf32> to vector<4x2x8x8xf32>
    %23 = arith.divf %19, %22 : vector<4x2x8x8xf32>
    %c0_16 = arith.constant 0 : index
    %c0_17 = arith.constant 0 : index
    %c0_18 = arith.constant 0 : index
    %c0_19 = arith.constant 0 : index
    %24 = vector.load %arg6[%c0_16, %c0_17, %c0_18, %c0_19] : memref<4x2x8x8xf32, #tpu.memory_space<vmem>>, vector<4x2x8x8xf32>
    tpu.vector_store %arg6[%c0_16, %c0_17, %c0_18, %c0_19], %23 {strides = array<i32>} : memref<4x2x8x8xf32, #tpu.memory_space<vmem>>, vector<4x2x8x8xf32>,
    %25 = vector.extract_strided_slice %8 {offsets = [0, 0], sizes = [16, 32], strides = [1, 1]} : vector<16x128xf32> to vector<16x32xf32>
    %26 = vector.shape_cast %25 : vector<16x32xf32> to vector<2x8x32xf32>
    %27 = vector.extract_strided_slice %23 {offsets = [0, 0, 0, 0], sizes = [1, 2, 8, 8], strides = [1, 1, 1, 1]} : vector<4x2x8x8xf32> to vector<1x2x8x8xf32>
    %28 = vector.shape_cast %27 : vector<1x2x8x8xf32> to vector<2x8x8xf32>
    "tpu.trace_start"() <{level = 10 : i32, message = "bqk,bkd->bqd"}> : () -> ()
    %cst_20 = arith.constant dense<0.000000e+00> : vector<2x8x32xf32>
    %29 = tpu.matmul %28, %26, %cst_20 {dimension_numbers = #tpu.dot_dimension_numbers<[2], [1], [1], [2], [0, 0, 0, 1, 1, 2], [0], [0]>} : vector<2x8x8xf32>, vector<2x8x32xf32>, vector<2x8x32xf32> -> vector<2x8x32xf32>
    "tpu.trace_stop"() : () -> ()
    %30 = vector.shape_cast %29 : vector<2x8x32xf32> to vector<16x32xf32>
    %31 = arith.addf %1, %30 : vector<16x32xf32>
    %32 = vector.extract_strided_slice %8 {offsets = [0, 32], sizes = [16, 32], strides = [1, 1]} : vector<16x128xf32> to vector<16x32xf32>
    %33 = vector.shape_cast %32 : vector<16x32xf32> to vector<2x8x32xf32>
    %34 = vector.extract_strided_slice %23 {offsets = [1, 0, 0, 0], sizes = [1, 2, 8, 8], strides = [1, 1, 1, 1]} : vector<4x2x8x8xf32> to vector<1x2x8x8xf32>
    %35 = vector.shape_cast %34 : vector<1x2x8x8xf32> to vector<2x8x8xf32>
    "tpu.trace_start"() <{level = 10 : i32, message = "bqk,bkd->bqd"}> : () -> ()
    %cst_21 = arith.constant dense<0.000000e+00> : vector<2x8x32xf32>
    %36 = tpu.matmul %35, %33, %cst_21 {dimension_numbers = #tpu.dot_dimension_numbers<[2], [1], [1], [2], [0, 0, 0, 1, 1, 2], [0], [0]>} : vector<2x8x8xf32>, vector<2x8x32xf32>, vector<2x8x32xf32> -> vector<2x8x32xf32>
    "tpu.trace_stop"() : () -> ()
    %37 = vector.shape_cast %36 : vector<2x8x32xf32> to vector<16x32xf32>
    %38 = arith.addf %31, %37 : vector<16x32xf32>
    %39 = vector.extract_strided_slice %8 {offsets = [0, 64], sizes = [16, 32], strides = [1, 1]} : vector<16x128xf32> to vector<16x32xf32>
    %40 = vector.shape_cast %39 : vector<16x32xf32> to vector<2x8x32xf32>
    %41 = vector.extract_strided_slice %23 {offsets = [2, 0, 0, 0], sizes = [1, 2, 8, 8], strides = [1, 1, 1, 1]} : vector<4x2x8x8xf32> to vector<1x2x8x8xf32>
    %42 = vector.shape_cast %41 : vector<1x2x8x8xf32> to vector<2x8x8xf32>
    "tpu.trace_start"() <{level = 10 : i32, message = "bqk,bkd->bqd"}> : () -> ()
    %cst_22 = arith.constant dense<0.000000e+00> : vector<2x8x32xf32>
    %43 = tpu.matmul %42, %40, %cst_22 {dimension_numbers = #tpu.dot_dimension_numbers<[2], [1], [1], [2], [0, 0, 0, 1, 1, 2], [0], [0]>} : vector<2x8x8xf32>, vector<2x8x32xf32>, vector<2x8x32xf32> -> vector<2x8x32xf32>
    "tpu.trace_stop"() : () -> ()
    %44 = vector.shape_cast %43 : vector<2x8x32xf32> to vector<16x32xf32>
    %45 = arith.addf %38, %44 : vector<16x32xf32>
    %46 = vector.extract_strided_slice %8 {offsets = [0, 96], sizes = [16, 32], strides = [1, 1]} : vector<16x128xf32> to vector<16x32xf32>
    %47 = vector.shape_cast %46 : vector<16x32xf32> to vector<2x8x32xf32>
    %48 = vector.extract_strided_slice %23 {offsets = [3, 0, 0, 0], sizes = [1, 2, 8, 8], strides = [1, 1, 1, 1]} : vector<4x2x8x8xf32> to vector<1x2x8x8xf32>
    %49 = vector.shape_cast %48 : vector<1x2x8x8xf32> to vector<2x8x8xf32>
    "tpu.trace_start"() <{level = 10 : i32, message = "bqk,bkd->bqd"}> : () -> ()
    %cst_23 = arith.constant dense<0.000000e+00> : vector<2x8x32xf32>
    %50 = tpu.matmul %49, %47, %cst_23 {dimension_numbers = #tpu.dot_dimension_numbers<[2], [1], [1], [2], [0, 0, 0, 1, 1, 2], [0], [0]>} : vector<2x8x8xf32>, vector<2x8x32xf32>, vector<2x8x32xf32> -> vector<2x8x32xf32>
    "tpu.trace_stop"() : () -> ()
    %51 = vector.shape_cast %50 : vector<2x8x32xf32> to vector<16x32xf32>
    %52 = arith.addf %45, %51 : vector<16x32xf32>
    %c2 = arith.constant 2 : index
    %c0_24 = arith.constant 0 : index
    %53 = vector.load %arg4[%c2, %c0_24] : memref<8x64xf32, #tpu.memory_space<vmem>>, vector<1x32xf32>
    %c3 = arith.constant 3 : index
    %c0_25 = arith.constant 0 : index
    %54 = vector.load %arg4[%c3, %c0_25] : memref<8x64xf32, #tpu.memory_space<vmem>>, vector<1x32xf32>
    %cst_26 = arith.constant dense<0.000000e+00> : vector<16xf32>
    %55 = vector.multi_reduction <add>, %52, %cst_26 [1] : vector<16x32xf32> to vector<16xf32>
    %56 = vector.shape_cast %55 : vector<16xf32> to vector<16x1xf32>
    %cst_27 = arith.constant 3.200000e+01 : f32
    %57 = vector.broadcast %cst_27 : f32 to vector<16x1xf32>
    %58 = arith.divf %56, %57 : vector<16x1xf32>
    %59 = vector.broadcast %58 : vector<16x1xf32> to vector<16x32xf32>
    %60 = arith.subf %52, %59 : vector<16x32xf32>
    %61 = arith.mulf %60, %60 : vector<16x32xf32>
    %cst_28 = arith.constant dense<0.000000e+00> : vector<16xf32>
    %62 = vector.multi_reduction <add>, %61, %cst_28 [1] : vector<16x32xf32> to vector<16xf32>
    %63 = vector.shape_cast %62 : vector<16xf32> to vector<16x1xf32>
    %cst_29 = arith.constant 3.200000e+01 : f32
    %64 = vector.broadcast %cst_29 : f32 to vector<16x1xf32>
    %65 = arith.divf %63, %64 : vector<16x1xf32>
    %66 = vector.broadcast %58 : vector<16x1xf32> to vector<16x32xf32>
    %67 = arith.subf %52, %66 : vector<16x32xf32>
    %cst_30 = arith.constant 9.99999997E-7 : f32
    %68 = vector.broadcast %cst_30 : f32 to vector<16x1xf32>
    %69 = arith.addf %65, %68 : vector<16x1xf32>
    %70 = math.rsqrt %69 : vector<16x1xf32>
    %71 = vector.broadcast %70 : vector<16x1xf32> to vector<16x32xf32>
    %72 = arith.mulf %67, %71 : vector<16x32xf32>
    %73 = vector.broadcast %53 : vector<1x32xf32> to vector<16x32xf32>
    %74 = arith.mulf %72, %73 : vector<16x32xf32>
    %75 = vector.broadcast %54 : vector<1x32xf32> to vector<16x32xf32>
    %76 = arith.addf %74, %75 : vector<16x32xf32>
    %cst_31 = arith.constant dense<0.000000e+00> : vector<16x160xf32>
    %77 = tpu.matmul %3, %5, %cst_31 {dimension_numbers = #tpu.dot_dimension_numbers<[1], [0], [0], [1], [0, 0, 1, 1], [], []>} : vector<16x32xf32>, vector<32x160xf32>, vector<16x160xf32> -> vector<16x160xf32>
    %78 = vector.extract_strided_slice %77 {offsets = [0, 0], sizes = [16, 128], strides = [1, 1]} : vector<16x160xf32> to vector<16x128xf32>
    %79 = vector.extract_strided_slice %77 {offsets = [0, 128], sizes = [16, 32], strides = [1, 1]} : vector<16x160xf32> to vector<16x32xf32>
    %80 = vector.shape_cast %79 : vector<16x32xf32> to vector<2x8x32xf32>
    %cst_32 = arith.constant dense<0.000000e+00> : vector<16x32xf32>
    %81 = tpu.matmul %76, %6, %cst_32 {dimension_numbers = #tpu.dot_dimension_numbers<[1], [0], [0], [1], [0, 0, 1, 1], [], []>} : vector<16x32xf32>, vector<32x32xf32>, vector<16x32xf32> -> vector<16x32xf32>
    %82 = vector.shape_cast %81 : vector<16x32xf32> to vector<2x8x32xf32>
    %83 = vector.extract_strided_slice %82 {offsets = [0, 0, 0], sizes = [2, 8, 8], strides = [1, 1, 1]} : vector<2x8x32xf32> to vector<2x8x8xf32>
    %84 = vector.extract_strided_slice %80 {offsets = [0, 0, 0], sizes = [2, 8, 8], strides = [1, 1, 1]} : vector<2x8x32xf32> to vector<2x8x8xf32>
    "tpu.trace_start"() <{level = 10 : i32, message = "bqd,bkd->bqk"}> : () -> ()
    %cst_33 = arith.constant dense<0.000000e+00> : vector<2x8x8xf32>
    %85 = tpu.matmul %83, %84, %cst_33 {dimension_numbers = #tpu.dot_dimension_numbers<[2], [2], [1], [1], [0, 0, 0, 1, 1, 1], [0], [0]>} : vector<2x8x8xf32>, vector<2x8x8xf32>, vector<2x8x8xf32> -> vector<2x8x8xf32>
    "tpu.trace_stop"() : () -> ()
    %86 = vector.extract_strided_slice %82 {offsets = [0, 0, 8], sizes = [2, 8, 8], strides = [1, 1, 1]} : vector<2x8x32xf32> to vector<2x8x8xf32>
    %87 = vector.extract_strided_slice %80 {offsets = [0, 0, 8], sizes = [2, 8, 8], strides = [1, 1, 1]} : vector<2x8x32xf32> to vector<2x8x8xf32>
    "tpu.trace_start"() <{level = 10 : i32, message = "bqd,bkd->bqk"}> : () -> ()
    %cst_34 = arith.constant dense<0.000000e+00> : vector<2x8x8xf32>
    %88 = tpu.matmul %86, %87, %cst_34 {dimension_numbers = #tpu.dot_dimension_numbers<[2], [2], [1], [1], [0, 0, 0, 1, 1, 1], [0], [0]>} : vector<2x8x8xf32>, vector<2x8x8xf32>, vector<2x8x8xf32> -> vector<2x8x8xf32>
    "tpu.trace_stop"() : () -> ()
    %89 = vector.extract_strided_slice %82 {offsets = [0, 0, 16], sizes = [2, 8, 8], strides = [1, 1, 1]} : vector<2x8x32xf32> to vector<2x8x8xf32>
    %90 = vector.extract_strided_slice %80 {offsets = [0, 0, 16], sizes = [2, 8, 8], strides = [1, 1, 1]} : vector<2x8x32xf32> to vector<2x8x8xf32>
    "tpu.trace_start"() <{level = 10 : i32, message = "bqd,bkd->bqk"}> : () -> ()
    %cst_35 = arith.constant dense<0.000000e+00> : vector<2x8x8xf32>
    %91 = tpu.matmul %89, %90, %cst_35 {dimension_numbers = #tpu.dot_dimension_numbers<[2], [2], [1], [1], [0, 0, 0, 1, 1, 1], [0], [0]>} : vector<2x8x8xf32>, vector<2x8x8xf32>, vector<2x8x8xf32> -> vector<2x8x8xf32>
    "tpu.trace_stop"() : () -> ()
    %92 = vector.extract_strided_slice %82 {offsets = [0, 0, 24], sizes = [2, 8, 8], strides = [1, 1, 1]} : vector<2x8x32xf32> to vector<2x8x8xf32>
    %93 = vector.extract_strided_slice %80 {offsets = [0, 0, 24], sizes = [2, 8, 8], strides = [1, 1, 1]} : vector<2x8x32xf32> to vector<2x8x8xf32>
    "tpu.trace_start"() <{level = 10 : i32, message = "bqd,bkd->bqk"}> : () -> ()
    %cst_36 = arith.constant dense<0.000000e+00> : vector<2x8x8xf32>
    %94 = tpu.matmul %92, %93, %cst_36 {dimension_numbers = #tpu.dot_dimension_numbers<[2], [2], [1], [1], [0, 0, 0, 1, 1, 1], [0], [0]>} : vector<2x8x8xf32>, vector<2x8x8xf32>, vector<2x8x8xf32> -> vector<2x8x8xf32>
    "tpu.trace_stop"() : () -> ()
    %95 = tpu.concatenate %85, %88, %91, %94 in 0 : vector<2x8x8xf32>, vector<2x8x8xf32>, vector<2x8x8xf32>, vector<2x8x8xf32> -> vector<8x8x8xf32>
    %96 = vector.shape_cast %95 : vector<8x8x8xf32> to vector<4x2x8x8xf32>
    %c10 = arith.constant 10 : index
    %c0_37 = arith.constant 0 : index
    %c0_38 = arith.constant 0 : index
    %97 = vector.load %arg1[%c10, %c0_37, %c0_38] : memref<12x8x8xf32, #tpu.memory_space<vmem>>, vector<2x8x8xf32>
    %98 = vector.shape_cast %97 : vector<2x8x8xf32> to vector<1x2x8x8xf32>
    %99 = vector.broadcast %98 : vector<1x2x8x8xf32> to vector<4x2x8x8xf32>
    %100 = arith.addf %96, %99 : vector<4x2x8x8xf32>
    %cst_39 = arith.constant dense<0xFF800000> : vector<4x2x8xf32>
    %101 = vector.multi_reduction <maximumf>, %100, %cst_39 [3] : vector<4x2x8x8xf32> to vector<4x2x8xf32>
    %102 = vector.shape_cast %101 : vector<4x2x8xf32> to vector<4x2x8x1xf32>
    %103 = vector.broadcast %102 : vector<4x2x8x1xf32> to vector<4x2x8x8xf32>
    %104 = arith.subf %100, %103 : vector<4x2x8x8xf32>
    %105 = math.exp %104 : vector<4x2x8x8xf32>
    %cst_40 = arith.constant dense<0.000000e+00> : vector<4x2x8xf32>
    %106 = vector.multi_reduction <add>, %105, %cst_40 [3] : vector<4x2x8x8xf32> to vector<4x2x8xf32>
    %107 = vector.shape_cast %106 : vector<4x2x8xf32> to vector<4x2x8x1xf32>
    %108 = vector.broadcast %107 : vector<4x2x8x1xf32> to vector<4x2x8x8xf32>
    %109 = arith.divf %105, %108 : vector<4x2x8x8xf32>
    %c0_41 = arith.constant 0 : index
    %c0_42 = arith.constant 0 : index
    %c0_43 = arith.constant 0 : index
    %c0_44 = arith.constant 0 : index
    %110 = vector.load %arg7[%c0_41, %c0_42, %c0_43, %c0_44] : memref<4x2x8x8xf32, #tpu.memory_space<vmem>>, vector<4x2x8x8xf32>
    tpu.vector_store %arg7[%c0_41, %c0_42, %c0_43, %c0_44], %109 {strides = array<i32>} : memref<4x2x8x8xf32, #tpu.memory_space<vmem>>, vector<4x2x8x8xf32>,
    %111 = vector.extract_strided_slice %78 {offsets = [0, 0], sizes = [16, 32], strides = [1, 1]} : vector<16x128xf32> to vector<16x32xf32>
    %112 = vector.shape_cast %111 : vector<16x32xf32> to vector<2x8x32xf32>
    %113 = vector.extract_strided_slice %109 {offsets = [0, 0, 0, 0], sizes = [1, 2, 8, 8], strides = [1, 1, 1, 1]} : vector<4x2x8x8xf32> to vector<1x2x8x8xf32>
    %114 = vector.shape_cast %113 : vector<1x2x8x8xf32> to vector<2x8x8xf32>
    "tpu.trace_start"() <{level = 10 : i32, message = "bqk,bkd->bqd"}> : () -> ()
    %cst_45 = arith.constant dense<0.000000e+00> : vector<2x8x32xf32>
    %115 = tpu.matmul %114, %112, %cst_45 {dimension_numbers = #tpu.dot_dimension_numbers<[2], [1], [1], [2], [0, 0, 0, 1, 1, 2], [0], [0]>} : vector<2x8x8xf32>, vector<2x8x32xf32>, vector<2x8x32xf32> -> vector<2x8x32xf32>
    "tpu.trace_stop"() : () -> ()
    %116 = vector.shape_cast %115 : vector<2x8x32xf32> to vector<16x32xf32>
    %117 = arith.addf %76, %116 : vector<16x32xf32>
    %118 = vector.extract_strided_slice %78 {offsets = [0, 32], sizes = [16, 32], strides = [1, 1]} : vector<16x128xf32> to vector<16x32xf32>
    %119 = vector.shape_cast %118 : vector<16x32xf32> to vector<2x8x32xf32>
    %120 = vector.extract_strided_slice %109 {offsets = [1, 0, 0, 0], sizes = [1, 2, 8, 8], strides = [1, 1, 1, 1]} : vector<4x2x8x8xf32> to vector<1x2x8x8xf32>
    %121 = vector.shape_cast %120 : vector<1x2x8x8xf32> to vector<2x8x8xf32>
    "tpu.trace_start"() <{level = 10 : i32, message = "bqk,bkd->bqd"}> : () -> ()
    %cst_46 = arith.constant dense<0.000000e+00> : vector<2x8x32xf32>
    %122 = tpu.matmul %121, %119, %cst_46 {dimension_numbers = #tpu.dot_dimension_numbers<[2], [1], [1], [2], [0, 0, 0, 1, 1, 2], [0], [0]>} : vector<2x8x8xf32>, vector<2x8x32xf32>, vector<2x8x32xf32> -> vector<2x8x32xf32>
    "tpu.trace_stop"() : () -> ()
    %123 = vector.shape_cast %122 : vector<2x8x32xf32> to vector<16x32xf32>
    %124 = arith.addf %117, %123 : vector<16x32xf32>
    %125 = vector.extract_strided_slice %78 {offsets = [0, 64], sizes = [16, 32], strides = [1, 1]} : vector<16x128xf32> to vector<16x32xf32>
    %126 = vector.shape_cast %125 : vector<16x32xf32> to vector<2x8x32xf32>
    %127 = vector.extract_strided_slice %109 {offsets = [2, 0, 0, 0], sizes = [1, 2, 8, 8], strides = [1, 1, 1, 1]} : vector<4x2x8x8xf32> to vector<1x2x8x8xf32>
    %128 = vector.shape_cast %127 : vector<1x2x8x8xf32> to vector<2x8x8xf32>
    "tpu.trace_start"() <{level = 10 : i32, message = "bqk,bkd->bqd"}> : () -> ()
    %cst_47 = arith.constant dense<0.000000e+00> : vector<2x8x32xf32>
    %129 = tpu.matmul %128, %126, %cst_47 {dimension_numbers = #tpu.dot_dimension_numbers<[2], [1], [1], [2], [0, 0, 0, 1, 1, 2], [0], [0]>} : vector<2x8x8xf32>, vector<2x8x32xf32>, vector<2x8x32xf32> -> vector<2x8x32xf32>
    "tpu.trace_stop"() : () -> ()
    %130 = vector.shape_cast %129 : vector<2x8x32xf32> to vector<16x32xf32>
    %131 = arith.addf %124, %130 : vector<16x32xf32>
    %132 = vector.extract_strided_slice %78 {offsets = [0, 96], sizes = [16, 32], strides = [1, 1]} : vector<16x128xf32> to vector<16x32xf32>
    %133 = vector.shape_cast %132 : vector<16x32xf32> to vector<2x8x32xf32>
    %134 = vector.extract_strided_slice %109 {offsets = [3, 0, 0, 0], sizes = [1, 2, 8, 8], strides = [1, 1, 1, 1]} : vector<4x2x8x8xf32> to vector<1x2x8x8xf32>
    %135 = vector.shape_cast %134 : vector<1x2x8x8xf32> to vector<2x8x8xf32>
    "tpu.trace_start"() <{level = 10 : i32, message = "bqk,bkd->bqd"}> : () -> ()
    %cst_48 = arith.constant dense<0.000000e+00> : vector<2x8x32xf32>
    %136 = tpu.matmul %135, %133, %cst_48 {dimension_numbers = #tpu.dot_dimension_numbers<[2], [1], [1], [2], [0, 0, 0, 1, 1, 2], [0], [0]>} : vector<2x8x8xf32>, vector<2x8x32xf32>, vector<2x8x32xf32> -> vector<2x8x32xf32>
    "tpu.trace_stop"() : () -> ()
    %137 = vector.shape_cast %136 : vector<2x8x32xf32> to vector<16x32xf32>
    %138 = arith.addf %131, %137 : vector<16x32xf32>
    %c4 = arith.constant 4 : index
    %c0_49 = arith.constant 0 : index
    %139 = vector.load %arg4[%c4, %c0_49] : memref<8x64xf32, #tpu.memory_space<vmem>>, vector<1x32xf32>
    %c5 = arith.constant 5 : index
    %c0_50 = arith.constant 0 : index
    %140 = vector.load %arg4[%c5, %c0_50] : memref<8x64xf32, #tpu.memory_space<vmem>>, vector<1x32xf32>
    %cst_51 = arith.constant dense<0.000000e+00> : vector<16xf32>
    %141 = vector.multi_reduction <add>, %138, %cst_51 [1] : vector<16x32xf32> to vector<16xf32>
    %142 = vector.shape_cast %141 : vector<16xf32> to vector<16x1xf32>
    %cst_52 = arith.constant 3.200000e+01 : f32
    %143 = vector.broadcast %cst_52 : f32 to vector<16x1xf32>
    %144 = arith.divf %142, %143 : vector<16x1xf32>
    %145 = vector.broadcast %144 : vector<16x1xf32> to vector<16x32xf32>
    %146 = arith.subf %138, %145 : vector<16x32xf32>
    %147 = arith.mulf %146, %146 : vector<16x32xf32>
    %cst_53 = arith.constant dense<0.000000e+00> : vector<16xf32>
    %148 = vector.multi_reduction <add>, %147, %cst_53 [1] : vector<16x32xf32> to vector<16xf32>
    %149 = vector.shape_cast %148 : vector<16xf32> to vector<16x1xf32>
    %cst_54 = arith.constant 3.200000e+01 : f32
    %150 = vector.broadcast %cst_54 : f32 to vector<16x1xf32>
    %151 = arith.divf %149, %150 : vector<16x1xf32>
    %152 = vector.broadcast %144 : vector<16x1xf32> to vector<16x32xf32>
    %153 = arith.subf %138, %152 : vector<16x32xf32>
    %cst_55 = arith.constant 9.99999997E-7 : f32
    %154 = vector.broadcast %cst_55 : f32 to vector<16x1xf32>
    %155 = arith.addf %151, %154 : vector<16x1xf32>
    %156 = math.rsqrt %155 : vector<16x1xf32>
    %157 = vector.broadcast %156 : vector<16x1xf32> to vector<16x32xf32>
    %158 = arith.mulf %153, %157 : vector<16x32xf32>
    %159 = vector.broadcast %139 : vector<1x32xf32> to vector<16x32xf32>
    %160 = arith.mulf %158, %159 : vector<16x32xf32>
    %161 = vector.broadcast %140 : vector<1x32xf32> to vector<16x32xf32>
    %162 = arith.addf %160, %161 : vector<16x32xf32>
    %cst_56 = arith.constant dense<0.000000e+00> : vector<16x64xf32>
    %163 = tpu.matmul %162, %7, %cst_56 {dimension_numbers = #tpu.dot_dimension_numbers<[1], [0], [0], [1], [0, 0, 1, 1], [], []>} : vector<16x32xf32>, vector<32x64xf32>, vector<16x64xf32> -> vector<16x64xf32>
    %c0_57 = arith.constant 0 : index
    %c0_58 = arith.constant 0 : index
    %164 = vector.load %arg4[%c0_57, %c0_58] : memref<8x64xf32, #tpu.memory_space<vmem>>, vector<1x64xf32>
    %165 = vector.broadcast %164 : vector<1x64xf32> to vector<16x64xf32>
    %166 = arith.addf %163, %165 : vector<16x64xf32>
    %cst_59 = arith.constant 0.000000e+00 : f32
    %167 = vector.broadcast %cst_59 : f32 to vector<16x64xf32>
    %168 = arith.maximumf %166, %167 : vector<16x64xf32>
    %c0_60 = arith.constant 0 : index
    %c0_61 = arith.constant 0 : index
    %169 = vector.load %arg3[%c0_60, %c0_61] : memref<64x32xf32, #tpu.memory_space<vmem>>, vector<64x32xf32>
    %cst_62 = arith.constant dense<0.000000e+00> : vector<16x32xf32>
    %170 = tpu.matmul %168, %169, %cst_62 {dimension_numbers = #tpu.dot_dimension_numbers<[1], [0], [0], [1], [0, 0, 1, 1], [], []>} : vector<16x64xf32>, vector<64x32xf32>, vector<16x32xf32> -> vector<16x32xf32>
    %c1_63 = arith.constant 1 : index
    %c0_64 = arith.constant 0 : index
    %171 = vector.load %arg4[%c1_63, %c0_64] : memref<8x64xf32, #tpu.memory_space<vmem>>, vector<1x32xf32>
    %172 = vector.broadcast %171 : vector<1x32xf32> to vector<16x32xf32>
    %173 = arith.addf %170, %172 : vector<16x32xf32>
    %174 = arith.addf %173, %162 : vector<16x32xf32>
    %c6 = arith.constant 6 : index
    %c0_65 = arith.constant 0 : index
    %175 = vector.load %arg4[%c6, %c0_65] : memref<8x64xf32, #tpu.memory_space<vmem>>, vector<1x32xf32>
    %c7 = arith.constant 7 : index
    %c0_66 = arith.constant 0 : index
    %176 = vector.load %arg4[%c7, %c0_66] : memref<8x64xf32, #tpu.memory_space<vmem>>, vector<1x32xf32>
    %cst_67 = arith.constant dense<0.000000e+00> : vector<16xf32>
    %177 = vector.multi_reduction <add>, %174, %cst_67 [1] : vector<16x32xf32> to vector<16xf32>
    %178 = vector.shape_cast %177 : vector<16xf32> to vector<16x1xf32>
    %cst_68 = arith.constant 3.200000e+01 : f32
    %179 = vector.broadcast %cst_68 : f32 to vector<16x1xf32>
    %180 = arith.divf %178, %179 : vector<16x1xf32>
    %181 = vector.broadcast %180 : vector<16x1xf32> to vector<16x32xf32>
    %182 = arith.subf %174, %181 : vector<16x32xf32>
    %183 = arith.mulf %182, %182 : vector<16x32xf32>
    %cst_69 = arith.constant dense<0.000000e+00> : vector<16xf32>
    %184 = vector.multi_reduction <add>, %183, %cst_69 [1] : vector<16x32xf32> to vector<16xf32>
    %185 = vector.shape_cast %184 : vector<16xf32> to vector<16x1xf32>
    %cst_70 = arith.constant 3.200000e+01 : f32
    %186 = vector.broadcast %cst_70 : f32 to vector<16x1xf32>
    %187 = arith.divf %185, %186 : vector<16x1xf32>
    %188 = vector.broadcast %180 : vector<16x1xf32> to vector<16x32xf32>
    %189 = arith.subf %174, %188 : vector<16x32xf32>
    %cst_71 = arith.constant 9.99999997E-7 : f32
    %190 = vector.broadcast %cst_71 : f32 to vector<16x1xf32>
    %191 = arith.addf %187, %190 : vector<16x1xf32>
    %192 = math.rsqrt %191 : vector<16x1xf32>
    %193 = vector.broadcast %192 : vector<16x1xf32> to vector<16x32xf32>
    %194 = arith.mulf %189, %193 : vector<16x32xf32>
    %195 = vector.broadcast %175 : vector<1x32xf32> to vector<16x32xf32>
    %196 = arith.mulf %194, %195 : vector<16x32xf32>
    %197 = vector.broadcast %176 : vector<1x32xf32> to vector<16x32xf32>
    %198 = arith.addf %196, %197 : vector<16x32xf32>
    %c0_72 = arith.constant 0 : index
    %c0_73 = arith.constant 0 : index
    %199 = vector.load %arg5[%c0_72, %c0_73] : memref<16x32xf32, #tpu.memory_space<vmem>>, vector<16x32xf32>
    tpu.vector_store %arg5[%c0_72, %c0_73], %198 {strides = array<i32>} : memref<16x32xf32, #tpu.memory_space<vmem>>, vector<16x32xf32>,
    return
  }
}

</mosaic_0001>

<bundles_post_ra>
// kernel: decoder_layer.1
= control target key start
LH: loop header
LB: loop body
LE: loop exit
PB: predicated region body
PF: predicated region fallthrough
CT: control target
= control target key end

     0   :  { %vm142_vm0 = vcmask 64512   ;;  %vm41_vm1 = vcmask 261120   ;;  %s3728_s0 = inlined_call_operand.vmem [shape: f32[2,16,32], index: 0, kind: input, shape index: {}]   ;;  %s3729_s1 = inlined_call_operand.vmem [shape: f32[12,8,8], index: 1, kind: input, shape index: {}]   ;;  %s3730_s2 = inlined_call_operand.vmem [shape: f32[32,384], index: 2, kind: input, shape index: {}]   ;;  %s3731_s3 = inlined_call_operand.vmem [shape: f32[64,32], index: 3, kind: input, shape index: {}]   ;;  %s3732_s4 = inlined_call_operand.vmem [shape: f32[8,64], index: 4, kind: input, shape index: {}]   ;;  %s3733_s5 = inlined_call_operand.hbm [shape: f32[16,32], index: 5, kind: output, shape index: {0}]   ;;  %s3734_s6 = inlined_call_operand.vmem [shape: f32[4,2,8,8], index: 6, kind: output, shape index: {1}]   ;;  %s3735_s7 = inlined_call_operand.vmem [shape: f32[4,2,8,8], index: 7, kind: output, shape index: {2}]  }
   0x1   :  { %v29_v0 = vld [vmem:[%s3730_s2] sm:$0xff]  ;;  %v30_v1 = vld [vmem:[%s3730_s2 + $0x18] sm:$0xff]  ;;  %v31_v5 = vld [vmem:[%s3730_s2 + $0x30] sm:$0xff] }
   0x2   :  { %v123_v2 = vld [vmem:[%s3729_s1] sm:$0xff]  ;;  %v3018_v3 = vpack.c.bf16 %v30_v1, %v29_v0  ;;  %v32_v6 = vld [vmem:[%s3730_s2 + $0x48] sm:$0xff]  ;;  %v125_v9 = vld [vmem:[%s3729_s1 + $0x10] sm:$0xff] }
   0x3   :  { %v2718_v4 = vld [vmem:[%s3729_s1 + $0x40] sm:$0xff]  ;;  %v3022_v8 = vpack.c.bf16 %v32_v6, %v31_v5  ;;  %v124_v10 = vld [vmem:[%s3729_s1 + $0x8] sm:$0xff]  ;;  %v126_v15 = vld [vmem:[%s3729_s1 + $0x18] sm:$0xff] }
   0x4   :  { %v134_v7 = vadd.f32 %v2718_v4, %v123_v2  ;;  %v2719_v11 = vld [vmem:[%s3729_s1 + $0x48] sm:$0xff]  ;;  %3019 = vmatprep.subr.bf16.mxu0 %v3018_v3  ;;  %v136_v12 = vadd.f32 %v2718_v4, %v125_v9  ;;  %v3306_v14 = vld [vmem:[%s3728_s0] sm:$0xff] }
   0x5   :  { %v135_v13 = vadd.f32 %v2719_v11, %v124_v10  ;;  %3021 = vmatpush3.bf16.msra.mxu0 %v3018_v3  ;;  %2854 = vmatprep.mubr.msk.f32.mxu0 %vm41_vm1, %v3306_v14  ;;  %v137_v17 = vadd.f32 %v2719_v11, %v126_v15  ;;  %v127_v18 = vld [vmem:[%s3729_s1 + $0x20] sm:$0xff]  ;;  %v128_v19 = vld [vmem:[%s3729_s1 + $0x28] sm:$0xff] }
   0x6   :  { %v143_v16 = vsel %vm142_vm0, %v134_v7, -inf  ;;  %3023 = vmatprep.subr.bf16.mxu0 %v3022_v8  ;;  %v149_v20 = vsel %vm142_vm0, %v136_v12, -inf }
   0x7   :  { %144 = vmax.xlane.f32.xlu0 %v143_v16 }
   0x8   :  { %13 = vsyncpa [#allocation3], 0  ;;  %150 = vmax.xlane.f32.xlu1 %v149_v20  ;;  %v146_v21 = vsel %vm142_vm0, %v135_v13, -inf  ;;  %v138_v22 = vadd.f32 %v2718_v4, %v127_v18  ;;  %v152_v23 = vsel %vm142_vm0, %v137_v17, -inf  ;;  %v139_v24 = vadd.f32 %v2719_v11, %v128_v19  ;;  %v129_v25 = vld [vmem:[%s3729_s1 + $0x30] sm:$0xff]  ;;  %v3329_v26 = vld [vmem:[%s3728_s0 + $0x8] sm:$0xff] }
   0x9   :  { %3025 = vmatpush3.bf16.msra.mxu0 %v3022_v8  ;;  %v130_v27 = vld [vmem:[%s3729_s1 + $0x38] sm:$0xff]  ;;  %v140_v29 = vadd.f32 %v2718_v4, %v129_v25  ;;  %v3225_v34 = vmov 0.0   ;;  %vm3226_vm2 = vmmov 0   ;;  %s3227_s10 = smov 96   ;;  %s3228_s11 = smov 64   ;;  %vm2564_vm3 = vcmask 523264  }
   0xa   :  { %v155_v28 = vsel %vm142_vm0, %v138_v22, -inf  ;;  %v158_v30 = vsel %vm142_vm0, %v139_v24, -inf  ;;  %v141_v31 = vadd.f32 %v2719_v11, %v130_v27  ;;  %2857 = vmatprep.subr.mxu1 %v3225_v34  ;;  %2859 = vmatprep.mubr.msk.f32.mxu1 %vm3226_vm2, %v3225_v34  ;;  %s3229_s12 = smov 32   ;;  %s3230_s29 = smov 120  }
   0xb   :  { %147 = vmax.xlane.f32.xlu0 %v146_v21  ;;  %v161_v32 = vsel %vm142_vm0, %v140_v29, -inf  ;;  %s3231_s30 = smov 112   ;;  %s3232_s8 = smov 104  }
   0xc   :  { %153 = vmax.xlane.f32.xlu1 %v152_v23  ;;  %2855 = vmatmul.mubr.msk.f32.vlgmr.msra.gmra.mrb[0].mxu0 %vm41_vm1, %v3329_v26  ;;  %v164_v33 = vsel %vm142_vm0, %v141_v31, -inf }
   0xd   :  { %962 = vmatprep.mubr.f32.mxu0 %v3225_v34 }
   0xf   :  { %156 = vmax.xlane.f32.xlu0 %v155_v28 }
  0x10   :  { %159 = vmax.xlane.f32.xlu1 %v158_v30 }
  0x13   :  { %162 = vmax.xlane.f32.xlu0 %v161_v32 }
  0x14   :  { %165 = vmax.xlane.f32.xlu1 %v164_v33 }
  0x94   :  { %v145_v35 = vpop.xlane.xlu0 %144 }
  0x95   :  { %v167_v36 = vsub.f32 %v134_v7, %v145_v35  ;;  %v151_v37 = vpop.xlane.xlu1 %150 }
  0x96   :  { %v169_v38 = vsub.f32 %v136_v12, %v151_v37 }
  0x97   :  { %v175_v39 = vmul.f32 1.442695, %v167_v36 }
  0x98   :  { %v179_v40 = vmul.f32 1.442695, %v169_v38  ;;  %v148_v41 = vpop.xlane.xlu0 %147 }
  0x99   :  { %3125 = vpow2.f32 %v175_v39  ;;  %v168_v42 = vsub.f32 %v135_v13, %v148_v41  ;;  %v154_v43 = vpop.xlane.xlu1 %153 }
  0x9a   :  { %3127 = vpow2.f32 %v179_v40  ;;  %v170_v44 = vsub.f32 %v137_v17, %v154_v43 }
  0x9b   :  { %v177_v45 = vmul.f32 1.442695, %v168_v42 }
  0x9c   :  { %v181_v46 = vmul.f32 1.442695, %v170_v44  ;;  %v157_v47 = vpop.xlane.xlu0 %156 }
  0x9d   :  { %3129 = vpow2.f32 %v177_v45  ;;  %v171_v48 = vsub.f32 %v138_v22, %v157_v47  ;;  %v160_v49 = vpop.xlane.xlu1 %159 }
  0x9e   :  { %3131 = vpow2.f32 %v181_v46  ;;  %v172_v50 = vsub.f32 %v139_v24, %v160_v49 }
  0x9f   :  { %v183_v51 = vmul.f32 1.442695, %v171_v48 }
  0xa0   :  { %v185_v52 = vmul.f32 1.442695, %v172_v50  ;;  %v163_v53 = vpop.xlane.xlu0 %162 }
  0xa1   :  { %3133 = vpow2.f32 %v183_v51  ;;  %v173_v54 = vsub.f32 %v140_v29, %v163_v53  ;;  %v166_v55 = vpop.xlane.xlu1 %165 }
  0xa2   :  { %3135 = vpow2.f32 %v185_v52  ;;  %v174_v56 = vsub.f32 %v141_v31, %v166_v55  ;;  %v40_v55 = vld [vmem:[%s3730_s2 + $0x58] sm:$0xff] }
  0xa3   :  { %v3126_v57 = vpop.eup %3125  ;;  %v187_v58 = vmul.f32 1.442695, %v173_v54  ;;  %v38_v54 = vld [vmem:[%s3730_s2 + $0x40] sm:$0xff] }
  0xa4   :  { %v3342_v59 = vpop.eup %3127  ;;  %v189_v60 = vmul.f32 1.442695, %v174_v56  ;;  %v191_v61 = vsel %vm142_vm0, %v3126_v57, 0.0 }
  0xa5   :  { %3137 = vpow2.f32 %v187_v58  ;;  %192 = vadd.xlane.f32.xlu0 %v191_v61  ;;  %v197_v62 = vsel %vm142_vm0, %v3342_v59, 0.0 }
  0xa6   :  { %3139 = vpow2.f32 %v189_v60 }
  0xa7   :  { %v3130_v63 = vpop.eup %3129 }
  0xa8   :  { %v3347_v0 = vpop.eup %3131  ;;  %v194_v1 = vsel %vm142_vm0, %v3130_v63, 0.0 }
  0xa9   :  { %198 = vadd.xlane.f32.xlu0 %v197_v62  ;;  %195 = vadd.xlane.f32.xlu1 %v194_v1  ;;  %v200_v2 = vsel %vm142_vm0, %v3347_v0, 0.0  ;;  %v34_v1 = vld [vmem:[%s3730_s2 + $0x10] sm:$0xff] }
  0xab   :  { %v3134_v3 = vpop.eup %3133 }
  0xac   :  { %v3352_v4 = vpop.eup %3135  ;;  %v203_v5 = vsel %vm142_vm0, %v3134_v3, 0.0 }
  0xad   :  { %201 = vadd.xlane.f32.xlu1 %v200_v2  ;;  %204 = vadd.xlane.f32.xlu0 %v203_v5  ;;  %v206_v6 = vsel %vm142_vm0, %v3352_v4, 0.0  ;;  %v36_v2 = vld [vmem:[%s3730_s2 + $0x28] sm:$0xff] }
  0xae   :  { %v33_v5 = vld [vmem:[%s3730_s2 + $0x8] sm:$0xff] }
  0xaf   :  { %v3138_v7 = vpop.eup %3137 }
  0xb0   :  { %v3357_v8 = vpop.eup %3139  ;;  %v209_v9 = vsel %vm142_vm0, %v3138_v7, 0.0 }
  0xb1   :  { %207 = vadd.xlane.f32.xlu1 %v206_v6  ;;  %210 = vadd.xlane.f32.xlu0 %v209_v9  ;;  %v212_v10 = vsel %vm142_vm0, %v3357_v8, 0.0  ;;  %v35_v6 = vld [vmem:[%s3730_s2 + $0x20] sm:$0xff]  ;;  %v37_v9 = vld [vmem:[%s3730_s2 + $0x38] sm:$0xff] }
  0xb5   :  { %213 = vadd.xlane.f32.xlu1 %v212_v10  ;;  %v39_v10 = vld [vmem:[%s3730_s2 + $0x50] sm:$0xff] }
  0xdf   :  { %v2856_v11 = vpop.f32.mrb[0].mxu0 }
  0xe0   :  { %465 = vrot.lane.b32.xlu1 %v2856_v11, %s3227_s10  ;;  %v114_v12 = vpop.f32.mrb[1].mxu0 }
  0xe1   :  { %388 = vrot.lane.b32.xlu0 %v114_v12, %s3227_s10  ;;  %2858 = vmatpush3.msra.mxu1 %v114_v12 }
  0xe2   :  { %2862 = vmatprep.subr.mxu1 %v3225_v34 }
  0xe4   :  { %543 = vrot.lane.b32.xlu1 %v114_v12, %s3228_s11 }
  0xe5   :  { %697 = vrot.lane.b32.xlu0 %v114_v12, %s3229_s12  ;;  %v2714_v12 = vld [vmem:[%s3728_s0 + $0x10] sm:$0xff] }
  0xe8   :  { %619 = vrot.lane.b32.xlu1 %v2856_v11, %s3228_s11 }
  0xec   :  { %773 = vrot.lane.b32.xlu1 %v2856_v11, %s3229_s12 }
 0x132   :  { %v193_v13 = vpop.xlane.xlu0 %192 }
 0x133   :  { %3141 = vrcp.f32 %v193_v13  ;;  %v2715_v13 = vld [vmem:[%s3728_s0 + $0x18] sm:$0xff]  ;;  %s3233_s0 = smov [#allocation2]  }
 0x136   :  { %v196_v15 = vpop.xlane.xlu1 %195  ;;  %v199_v16 = vpop.xlane.xlu0 %198 }
 0x137   :  { %3143 = vrcp.f32 %v196_v15 }
 0x138   :  { %3145 = vrcp.f32 %v199_v16 }
 0x13a   :  { %v202_v17 = vpop.xlane.xlu1 %201  ;;  %v205_v18 = vpop.xlane.xlu0 %204 }
 0x13b   :  { %3147 = vrcp.f32 %v202_v17 }
 0x13c   :  { %3149 = vrcp.f32 %v205_v18 }
 0x13d   :  { %v3142_v19 = vpop.eup %3141 }
 0x13e   :  { %v208_v20 = vpop.xlane.xlu1 %207  ;;  %v211_v21 = vpop.xlane.xlu0 %210  ;;  %v216_v22 = vmul.f32 %v3142_v19, %v3126_v57 }
 0x13f   :  { %3151 = vrcp.f32 %v208_v20 }
 0x140   :  { %3153 = vrcp.f32 %v211_v21  ;;  %231 = vst.msk [vmem:[%s3734_s6] sm:$0xff] %vm142_vm0, %v216_v22  ;;  %2860 = vmatmul.mubr.msk.f32.vlgmr.msra.gmra.mrb[0].mxu1 %vm142_vm0, %v216_v22 }
 0x141   :  { %v3144_v23 = vpop.eup %3143  ;;  %2863 = vmatpush3.msra.mxu1 %v2856_v11  ;;  %2864 = vmatprep.mubr.msk.f32.mxu1 %vm3226_vm2, %v3225_v34  ;;  %v3032_v11 = vpack.c.bf16 %v39_v10, %v37_v9 }
 0x142   :  { %v3146_v24 = vpop.eup %3145  ;;  %v218_v25 = vmul.f32 %v3144_v23, %v3130_v63  ;;  %v214_v27 = vpop.xlane.xlu1 %213  ;;  %2867 = vmatprep.subr.mxu1 %v3225_v34 }
 0x143   :  { %v220_v28 = vmul.f32 %v3146_v24, %v3342_v59  ;;  %3155 = vrcp.f32 %v214_v27 }
 0x144   :  { %232 = vst.msk [vmem:[%s3734_s6 + $0x8] sm:$0xff] %vm142_vm0, %v218_v25  ;;  %2865 = vmatmul.mubr.msk.f32.vlgmr.msra.gmra.mrb[2].mxu1 %vm142_vm0, %v218_v25 }
 0x145   :  { %v3148_v29 = vpop.eup %3147  ;;  %233 = vst.msk [vmem:[%s3734_s6 + $0x10] sm:$0xff] %vm142_vm0, %v220_v28  ;;  %2869 = vmatprep.mubr.msk.f32.mxu1 %vm3226_vm2, %v3225_v34 }
 0x146   :  { %v3150_v30 = vpop.eup %3149  ;;  %v222_v31 = vmul.f32 %v3148_v29, %v3347_v0 }
 0x147   :  { %v224_v32 = vmul.f32 %v3150_v30, %v3134_v3  ;;  %v3460_v3 = vpack.i.bf16 %v36_v2, %v34_v1 }
 0x148   :  { %234 = vst.msk [vmem:[%s3734_s6 + $0x18] sm:$0xff] %vm142_vm0, %v222_v31 }
 0x149   :  { %v3152_v33 = vpop.eup %3151  ;;  %235 = vst.msk [vmem:[%s3734_s6 + $0x20] sm:$0xff] %vm142_vm0, %v224_v32 }
 0x14a   :  { %v3154_v35 = vpop.eup %3153  ;;  %v226_v36 = vmul.f32 %v3152_v33, %v3352_v4  ;;  %v3026_v4 = vpack.c.bf16 %v36_v2, %v34_v1  ;;  %v2729_v33 = vld [vmem:[%s3732_s4 + $0x3] ss:$0 sm:$0xff] }
 0x14b   :  { %v228_v37 = vmul.f32 %v3154_v35, %v3138_v7  ;;  %v3028_v7 = vpack.c.bf16 %v35_v6, %v33_v5 }
 0x14c   :  { %236 = vst.msk [vmem:[%s3734_s6 + $0x28] sm:$0xff] %vm142_vm0, %v226_v36  ;;  %3027 = vmatprep.subr.bf16.mxu0 %v3026_v4 }
 0x14d   :  { %v3156_v38 = vpop.eup %3155  ;;  %237 = vst.msk [vmem:[%s3734_s6 + $0x30] sm:$0xff] %vm142_vm0, %v228_v37  ;;  %3029 = vmatpush1.bf16.msra.mxu0 %v3028_v7 }
 0x14e   :  { %v230_v39 = vmul.f32 %v3156_v38, %v3357_v8  ;;  %v3030_v8 = vpack.c.bf16 %v40_v55, %v38_v54 }
 0x150   :  { %238 = vst.msk [vmem:[%s3734_s6 + $0x38] sm:$0xff] %vm142_vm0, %v230_v39  ;;  %3031 = vmatprep.subr.bf16.mxu0 %v3030_v8 }
 0x151   :  { %3033 = vmatpush1.bf16.msra.mxu0 %v3032_v11 }
 0x152   :  { %v466_v40 = vpop.permute.xlu1 %465 }
 0x153   :  { %v389_v41 = vpop.permute.xlu0 %388 }
 0x154   :  { %2868 = vmatpush3.msra.mxu1 %v389_v41  ;;  %2730 = vmatmul.mubr.msk.f32.vlgmr.msra.gmra.mrb[2].mxu0 %vm41_vm1, %v2714_v12 }
 0x155   :  { %2870 = vmatmul.mubr.msk.f32.vlgmr.msra.gmra.mrb[0].mxu1 %vm142_vm0, %v220_v28  ;;  %2872 = vmatprep.subr.mxu1 %v3225_v34 }
 0x156   :  { %2873 = vmatpush3.msra.mxu1 %v466_v40  ;;  %2874 = vmatprep.mubr.msk.f32.mxu1 %vm3226_vm2, %v3225_v34  ;;  %v544_v42 = vpop.permute.xlu1 %543 }
 0x157   :  { %2877 = vmatprep.subr.mxu1 %v3225_v34  ;;  %v698_v44 = vpop.permute.xlu0 %697  ;;  %968 = vmatprep.mubr.f32.mxu0 %v3225_v34 }
 0x158   :  { %2731 = vmatmul.mubr.msk.f32.gmra.mrb[4].mxu0 %vm41_vm1, %v2715_v13 }
 0x159   :  { %2875 = vmatmul.mubr.msk.f32.vlgmr.msra.gmra.mrb[2].mxu1 %vm142_vm0, %v222_v31  ;;  %v2728_v31 = vld [vmem:[%s3732_s4 + $0x2] ss:$0 sm:$0xff] }
 0x15a   :  { %2878 = vmatpush3.msra.mxu1 %v544_v42  ;;  %2879 = vmatprep.mubr.msk.f32.mxu1 %vm3226_vm2, %v3225_v34  ;;  %v620_v43 = vpop.permute.xlu1 %619 }
 0x15b   :  { %2882 = vmatprep.subr.mxu1 %v3225_v34 }
 0x15d   :  { %2880 = vmatmul.mubr.msk.f32.vlgmr.msra.gmra.mrb[0].mxu1 %vm142_vm0, %v224_v32 }
 0x15e   :  { %2883 = vmatpush3.msra.mxu1 %v620_v43  ;;  %2884 = vmatprep.mubr.msk.f32.mxu1 %vm3226_vm2, %v3225_v34  ;;  %v774_v45 = vpop.permute.xlu1 %773 }
 0x15f   :  { %2887 = vmatprep.subr.mxu1 %v3225_v34 }
 0x161   :  { %2885 = vmatmul.mubr.msk.f32.vlgmr.msra.gmra.mrb[2].mxu1 %vm142_vm0, %v226_v36 }
 0x162   :  { %2888 = vmatpush3.msra.mxu1 %v698_v44  ;;  %2889 = vmatprep.mubr.msk.f32.mxu1 %vm3226_vm2, %v3225_v34 }
 0x163   :  { %2892 = vmatprep.subr.mxu1 %v3225_v34 }
 0x165   :  { %2890 = vmatmul.mubr.msk.f32.vlgmr.msra.gmra.mrb[0].mxu1 %vm142_vm0, %v228_v37 }
 0x166   :  { %2893 = vmatpush3.msra.mxu1 %v774_v45  ;;  %2894 = vmatprep.mubr.msk.f32.mxu1 %vm3226_vm2, %v3225_v34 }
 0x167   :  { %2908 = vmatprep.subr.mxu1 %v3225_v34 }
 0x169   :  { %2895 = vmatmul.mubr.msk.f32.vlgmr.msra.gmra.mrb[2].mxu1 %vm142_vm0, %v230_v39 }
 0x16a   :  { %2910 = vmatprep.mubr.msk.f32.mxu1 %vm3226_vm2, %v3225_v34 }
 0x227   :  { %v3502_v41 = vpop.f32.mrb[2].mxu0 }
 0x228   :  { %v966_v42 = vpop.f32.mrb[3].mxu0 }
 0x229   :  { %2909 = vmatpush3.xpose.msk.msra.mxu1 %vm142_vm0, %v966_v42 }
 0x22a   :  { %2918 = vmatprep.subr.mxu1 %v3225_v34 }
 0x22b   :  { %v3506_v43 = vpop.f32.mrb[4].mxu0 }
 0x22c   :  { %v972_v44 = vpop.f32.mrb[5].mxu0 }
 0x238   :  { %v769_v46 = vpop.f32.mrb[0].mxu1 }
 0x239   :  { %v3066_v47 = vadd.f32 %v769_v46, %v3306_v14  ;;  %v2891_v48 = vpop.f32.mrb[1].mxu1  ;;  %v3448_v14 = vpack.i.bf16 %v40_v55, %v38_v54 }
 0x23b   :  { %v853_v49 = vsel %vm41_vm1, %v3066_v47, 0.0 }
 0x23c   :  { %854 = vadd.xlane.f32.xlu0 %v853_v49  ;;  %v845_v50 = vpop.f32.mrb[2].mxu1 }
 0x23d   :  { %v3067_v51 = vadd.f32 %v845_v50, %v3329_v26  ;;  %v2896_v52 = vpop.f32.mrb[3].mxu1 }
 0x23f   :  { %v856_v53 = vsel %vm41_vm1, %v3067_v51, 0.0 }
 0x240   :  { %857 = vadd.xlane.f32.xlu1 %v856_v53 }
 0x251   :  { %3111 = vrot.lane.b32.xlu1 %v3448_v14, %s3227_s10 }
 0x255   :  { %1226 = vrot.lane.b32.xlu1 %v966_v42, %s3230_s29 }
 0x259   :  { %1304 = vrot.lane.b32.xlu1 %v972_v44, %s3230_s29 }
 0x2c9   :  { %v855_v56 = vpop.xlane.xlu0 %854 }
 0x2ca   :  { %v860_v57 = vmul.f32 0.03125, %v855_v56 }
 0x2cc   :  { %v862_v26 = vsub.f32 %v3066_v47, %v860_v57 }
 0x2cd   :  { %v858_v58 = vpop.xlane.xlu1 %857 }
 0x2ce   :  { %v861_v59 = vmul.f32 0.03125, %v858_v58  ;;  %v864_v60 = vmul.f32 %v862_v26, %v862_v26  ;;  %v2751_v58 = vld [vmem:[%s3729_s1 + $0x58] sm:$0xff] }
 0x2d0   :  { %v863_v61 = vsub.f32 %v3067_v51, %v861_v59  ;;  %v866_v62 = vsel %vm41_vm1, %v864_v60, 0.0  ;;  %v2750_v59 = vld [vmem:[%s3729_s1 + $0x50] sm:$0xff] }
 0x2d1   :  { %867 = vadd.xlane.f32.xlu0 %v866_v62  ;;  %v3112_v19 = vpop.permute.xlu1 %3111 }
 0x2d2   :  { %v865_v63 = vmul.f32 %v863_v61, %v863_v61  ;;  %v3114_v22 = vunpack.i.h.bf16 %v3112_v19  ;;  %v3113_v23 = vunpack.i.l.bf16 %v3112_v19 }
 0x2d4   :  { %v869_v0 = vsel %vm41_vm1, %v865_v63, 0.0  ;;  %v3038_v29 = vpack.c.bf16 %v3114_v22, %v3113_v23 }
 0x2d5   :  { %870 = vadd.xlane.f32.xlu0 %v869_v0  ;;  %v1227_v45 = vpop.permute.xlu1 %1226 }
 0x2d9   :  { %v1305_v47 = vpop.permute.xlu1 %1304 }
 0x2eb   :  { %3106 = vrot.lane.b32.xlu0 %v3460_v3, %s3227_s10 }
 0x35e   :  { %v868_v15 = vpop.xlane.xlu0 %867 }
 0x35f   :  { %v872_v16 = vmul.f32 0.03125, %v868_v15 }
 0x361   :  { %v874_v17 = vadd.f32 1e-06, %v872_v16 }
 0x362   :  { %v871_v18 = vpop.xlane.xlu0 %870 }
 0x363   :  { %3157 = vrsqrt.f32 %v874_v17  ;;  %v873_v20 = vmul.f32 0.03125, %v871_v18 }
 0x365   :  { %v875_v21 = vadd.f32 1e-06, %v873_v20 }
 0x366   :  { %v3107_v24 = vpop.permute.xlu0 %3106 }
 0x367   :  { %3159 = vrsqrt.f32 %v875_v21  ;;  %v3109_v25 = vunpack.i.h.bf16 %v3107_v24  ;;  %v3108_v27 = vunpack.i.l.bf16 %v3107_v24 }
 0x369   :  { %v3034_v28 = vpack.c.bf16 %v3109_v25, %v3108_v27 }
 0x36b   :  { %3035 = vmatprep.subr.bf16.mxu0 %v3034_v28 }
 0x36c   :  { %3037 = vmatpush3.bf16.msra.mxu0 %v3034_v28 }
 0x36d   :  { %v3158_v30 = vpop.eup %3157  ;;  %3039 = vmatprep.subr.bf16.mxu0 %v3038_v29 }
 0x36e   :  { %v878_v32 = vmul.f32 %v3158_v30, %v862_v26 }
 0x370   :  { %v884_v35 = vmul.f32 %v2728_v31, %v878_v32  ;;  %3041 = vmatpush3.bf16.msra.mxu0 %v3038_v29 }
 0x371   :  { %v3160_v36 = vpop.eup %3159  ;;  %2913 = vmatprep.subr.mxu0 %v3225_v34 }
 0x372   :  { %v879_v37 = vmul.f32 %v3160_v36, %v863_v61  ;;  %v3492_v38 = vadd.f32 %v2729_v33, %v884_v35 }
 0x374   :  { %v885_v39 = vmul.f32 %v2728_v31, %v879_v37  ;;  %2905 = vmatprep.mubr.msk.f32.mxu0 %vm41_vm1, %v3492_v38 }
 0x376   :  { %v3496_v40 = vadd.f32 %v2729_v33, %v885_v39 }
 0x378   :  { %2906 = vmatmul.mubr.msk.f32.vlgmr.msra.gmra.mrb[6].mxu0 %vm41_vm1, %v3496_v40 }
 0x379   :  { %2915 = vmatprep.mubr.msk.f32.mxu0 %vm3226_vm2, %v3225_v34  ;;  %2914 = vmatpush3.xpose.msk.msra.mxu0 %vm142_vm0, %v972_v44 }
 0x37a   :  { %2923 = vmatprep.subr.mxu0 %v3225_v34 }
 0x44b   :  { %v2907_v46 = vpop.f32.mrb[6].mxu0 }
 0x44c   :  { %1302 = vrot.lane.b32.xlu1 %v2907_v46, %s3230_s29  ;;  %v1063_v48 = vpop.f32.mrb[7].mxu0  ;;  %2916 = vmatmul.mubr.msk.f32.vlgmr.msra.gmra.mrb[8].mxu0 %vm142_vm0, %v2907_v46 }
 0x44d   :  { %1224 = vrot.lane.b32.xlu0 %v1063_v48, %s3230_s29  ;;  %2911 = vmatmul.mubr.msk.f32.vlgmr.msra.gmra.mrb[4].mxu1 %vm142_vm0, %v1063_v48 }
 0x44e   :  { %2919 = vmatpush3.xpose.msk.msra.mxu1 %vm142_vm0, %v1227_v45  ;;  %2924 = vmatpush3.xpose.msk.msra.mxu0 %vm142_vm0, %v1305_v47 }
 0x44f   :  { %2925 = vmatprep.mubr.msk.f32.mxu0 %vm3226_vm2, %v3225_v34  ;;  %2920 = vmatprep.mubr.msk.f32.mxu1 %vm3226_vm2, %v3225_v34 }
 0x450   :  { %1460 = vrot.lane.b32.xlu1 %v972_v44, %s3231_s30  ;;  %2933 = vmatprep.subr.mxu0 %v3225_v34 }
 0x451   :  { %1382 = vrot.lane.b32.xlu0 %v966_v42, %s3231_s30  ;;  %2928 = vmatprep.subr.mxu1 %v3225_v34 }
 0x454   :  { %1458 = vrot.lane.b32.xlu1 %v2907_v46, %s3231_s30 }
 0x455   :  { %1380 = vrot.lane.b32.xlu0 %v1063_v48, %s3231_s30 }
 0x458   :  { %1616 = vrot.lane.b32.xlu1 %v972_v44, %s3232_s8 }
 0x459   :  { %1538 = vrot.lane.b32.xlu0 %v966_v42, %s3232_s8 }
 0x45c   :  { %1614 = vrot.lane.b32.xlu1 %v2907_v46, %s3232_s8 }
 0x45d   :  { %1536 = vrot.lane.b32.xlu0 %v1063_v48, %s3232_s8 }
 0x4be   :  { %v1303_v49 = vpop.permute.xlu1 %1302 }
 0x4bf   :  { %2926 = vmatmul.mubr.msk.f32.vlgmr.msra.gmra.mrb[10].mxu0 %vm142_vm0, %v1303_v49  ;;  %v1225_v50 = vpop.permute.xlu0 %1224 }
 0x4c0   :  { %2921 = vmatmul.mubr.msk.f32.vlgmr.msra.gmra.mrb[6].mxu1 %vm142_vm0, %v1225_v50  ;;  %2935 = vmatprep.mubr.msk.f32.mxu0 %vm3226_vm2, %v3225_v34 }
 0x4c1   :  { %2930 = vmatprep.mubr.msk.f32.mxu1 %vm3226_vm2, %v3225_v34 }
 0x4c2   :  { %v1461_v51 = vpop.permute.xlu1 %1460 }
 0x4c3   :  { %2934 = vmatpush3.xpose.msk.msra.mxu0 %vm142_vm0, %v1461_v51  ;;  %v1383_v52 = vpop.permute.xlu0 %1382 }
 0x4c4   :  { %2929 = vmatpush3.xpose.msk.msra.mxu1 %vm142_vm0, %v1383_v52  ;;  %2943 = vmatprep.subr.mxu0 %v3225_v34 }
 0x4c5   :  { %2938 = vmatprep.subr.mxu1 %v3225_v34 }
 0x4c6   :  { %v1459_v53 = vpop.permute.xlu1 %1458 }
 0x4c7   :  { %2936 = vmatmul.mubr.msk.f32.vlgmr.msra.gmra.mrb[12].mxu0 %vm142_vm0, %v1459_v53  ;;  %v1381_v54 = vpop.permute.xlu0 %1380 }
 0x4c8   :  { %2931 = vmatmul.mubr.msk.f32.vlgmr.msra.gmra.mrb[8].mxu1 %vm142_vm0, %v1381_v54  ;;  %2945 = vmatprep.mubr.msk.f32.mxu0 %vm3226_vm2, %v3225_v34 }
 0x4c9   :  { %2940 = vmatprep.mubr.msk.f32.mxu1 %vm3226_vm2, %v3225_v34 }
 0x4ca   :  { %v1617_v55 = vpop.permute.xlu1 %1616 }
 0x4cb   :  { %2944 = vmatpush3.xpose.msk.msra.mxu0 %vm142_vm0, %v1617_v55  ;;  %v1539_v56 = vpop.permute.xlu0 %1538 }
 0x4cc   :  { %2939 = vmatpush3.xpose.msk.msra.mxu1 %vm142_vm0, %v1539_v56  ;;  %2953 = vmatprep.subr.mxu0 %v3225_v34 }
 0x4cd   :  { %2948 = vmatprep.subr.mxu1 %v3225_v34 }
 0x4ce   :  { %v1615_v57 = vpop.permute.xlu1 %1614 }
 0x4cf   :  { %2946 = vmatmul.mubr.msk.f32.vlgmr.msra.gmra.mrb[14].mxu0 %vm142_vm0, %v1615_v57  ;;  %v1537_v26 = vpop.permute.xlu0 %1536 }
 0x4d0   :  { %2954 = vmatpush3.msra.mxu0 %v3506_v43  ;;  %2941 = vmatmul.mubr.msk.f32.vlgmr.msra.gmra.mrb[10].mxu1 %vm142_vm0, %v1537_v26 }
 0x4d1   :  { %2949 = vmatpush3.msra.mxu1 %v3502_v41  ;;  %2955 = vmatprep.mubr.msk.f32.mxu0 %vm3226_vm2, %v3225_v34 }
 0x4d2   :  { %2950 = vmatprep.mubr.msk.f32.mxu1 %vm3226_vm2, %v3225_v34  ;;  %2958 = vmatprep.subr.mxu1 %v3225_v34 }
 0x4d3   :  { %2963 = vmatprep.subr.mxu0 %v3225_v34 }
 0x51f   :  { %v1220_v60 = vpop.f32.mrb[8].mxu0 }
 0x520   :  { %v1696_v61 = vadd.f32 %v2751_v58, %v1220_v60  ;;  %v1144_v62 = vpop.f32.mrb[4].mxu1  ;;  %v2917_v63 = vpop.f32.mrb[9].mxu0 }
 0x521   :  { %v1695_v0 = vadd.f32 %v2750_v59, %v1144_v62  ;;  %v2912_v1 = vpop.f32.mrb[5].mxu1 }
 0x522   :  { %v1706_v2 = vsel %vm142_vm0, %v1696_v61, -inf }
 0x523   :  { %1707 = vmax.xlane.f32.xlu1 %v1706_v2  ;;  %v1703_v4 = vsel %vm142_vm0, %v1695_v0, -inf }
 0x524   :  { %1704 = vmax.xlane.f32.xlu0 %v1703_v4 }
 0x592   :  { %v1376_v5 = vpop.f32.mrb[10].mxu0 }
 0x593   :  { %v1298_v6 = vpop.f32.mrb[6].mxu1  ;;  %v2927_v7 = vpop.f32.mrb[11].mxu0  ;;  %v1698_v10 = vadd.f32 %v2751_v58, %v1376_v5 }
 0x594   :  { %v1697_v8 = vadd.f32 %v2750_v59, %v1298_v6  ;;  %v2922_v9 = vpop.f32.mrb[7].mxu1 }
 0x595   :  { %v1712_v13 = vsel %vm142_vm0, %v1698_v10, -inf }
 0x596   :  { %v1709_v11 = vsel %vm142_vm0, %v1697_v8, -inf }
 0x597   :  { %1710 = vmax.xlane.f32.xlu0 %v1709_v11 }
 0x59a   :  { %v1532_v12 = vpop.f32.mrb[12].mxu0 }
 0x59b   :  { %v3560_v15 = vadd.f32 %v2751_v58, %v1532_v12  ;;  %v2937_v16 = vpop.f32.mrb[13].mxu0  ;;  %1713 = vmax.xlane.f32.xlu0 %v1712_v13  ;;  %v1454_v17 = vpop.f32.mrb[8].mxu1 }
 0x59c   :  { %v1699_v18 = vadd.f32 %v2750_v59, %v1454_v17  ;;  %v2932_v19 = vpop.f32.mrb[9].mxu1 }
 0x59d   :  { %v1718_v20 = vsel %vm142_vm0, %v3560_v15, -inf }
 0x59e   :  { %1719 = vmax.xlane.f32.xlu1 %v1718_v20  ;;  %v1715_v21 = vsel %vm142_vm0, %v1699_v18, -inf }
 0x59f   :  { %1716 = vmax.xlane.f32.xlu0 %v1715_v21 }
 0x5a2   :  { %v1688_v22 = vpop.f32.mrb[14].mxu0 }
 0x5a3   :  { %v3565_v23 = vadd.f32 %v2751_v58, %v1688_v22  ;;  %v1610_v24 = vpop.f32.mrb[10].mxu1  ;;  %v2947_v25 = vpop.f32.mrb[15].mxu0 }
 0x5a4   :  { %v1701_v27 = vadd.f32 %v2750_v59, %v1610_v24  ;;  %v2942_v28 = vpop.f32.mrb[11].mxu1 }
 0x5a5   :  { %v1724_v29 = vsel %vm142_vm0, %v3565_v23, -inf }
 0x5a6   :  { %1725 = vmax.xlane.f32.xlu1 %v1724_v29  ;;  %v1721_v30 = vsel %vm142_vm0, %v1701_v27, -inf }
 0x5a7   :  { %1722 = vmax.xlane.f32.xlu0 %v1721_v30 }
 0x5b0   :  { %v1708_v31 = vpop.xlane.xlu1 %1707 }
 0x5b1   :  { %v1728_v32 = vsub.f32 %v1696_v61, %v1708_v31  ;;  %v1705_v33 = vpop.xlane.xlu0 %1704 }
 0x5b2   :  { %v1727_v35 = vsub.f32 %v1695_v0, %v1705_v33 }
 0x5b3   :  { %v1737_v36 = vmul.f32 1.442695, %v1728_v32 }
 0x5b4   :  { %v1735_v37 = vmul.f32 1.442695, %v1727_v35 }
 0x5b5   :  { %3161 = vpow2.f32 %v1737_v36 }
 0x5b6   :  { %3163 = vpow2.f32 %v1735_v37 }
 0x5bf   :  { %v3162_v39 = vpop.eup %3161 }
 0x5c0   :  { %v3164_v42 = vpop.eup %3163  ;;  %v1754_v44 = vsel %vm142_vm0, %v3162_v39, 0.0 }
 0x5c1   :  { %1755 = vadd.xlane.f32.xlu1 %v1754_v44  ;;  %v1751_v45 = vsel %vm142_vm0, %v3164_v42, 0.0 }
 0x5c2   :  { %1752 = vadd.xlane.f32.xlu0 %v1751_v45 }
 0x624   :  { %v1711_v46 = vpop.xlane.xlu0 %1710 }
 0x625   :  { %v1729_v47 = vsub.f32 %v1697_v8, %v1711_v46 }
 0x627   :  { %v1739_v48 = vmul.f32 1.442695, %v1729_v47 }
 0x628   :  { %v1714_v49 = vpop.xlane.xlu0 %1713 }
 0x629   :  { %3165 = vpow2.f32 %v1739_v48  ;;  %v1730_v50 = vsub.f32 %v1698_v10, %v1714_v49 }
 0x62b   :  { %v1741_v51 = vmul.f32 1.442695, %v1730_v50  ;;  %v1720_v56 = vpop.xlane.xlu1 %1719 }
 0x62c   :  { %v1717_v57 = vpop.xlane.xlu0 %1716  ;;  %v1732_v6 = vsub.f32 %v3560_v15, %v1720_v56 }
 0x62d   :  { %3167 = vpow2.f32 %v1741_v51  ;;  %v1731_v61 = vsub.f32 %v1699_v18, %v1717_v57 }
 0x62e   :  { %v1745_v7 = vmul.f32 1.442695, %v1732_v6 }
 0x62f   :  { %v1743_v62 = vmul.f32 1.442695, %v1731_v61  ;;  %v2552_v61 = vld [vmem:[%s3731_s3 + $0x8] sm:$0xff] }
 0x633   :  { %v3572_v52 = vpop.eup %3165  ;;  %v1726_v26 = vpop.xlane.xlu1 %1725 }
 0x634   :  { %v1757_v53 = vsel %vm142_vm0, %v3572_v52, 0.0  ;;  %v1723_v58 = vpop.xlane.xlu0 %1722  ;;  %v1734_v8 = vsub.f32 %v3565_v23, %v1726_v26 }
 0x635   :  { %1758 = vadd.xlane.f32.xlu0 %v1757_v53  ;;  %v1733_v63 = vsub.f32 %v1701_v27, %v1723_v58 }
 0x636   :  { %v1749_v10 = vmul.f32 1.442695, %v1734_v8 }
 0x637   :  { %v3576_v54 = vpop.eup %3167  ;;  %v1747_v5 = vmul.f32 1.442695, %v1733_v63 }
 0x638   :  { %v1760_v55 = vsel %vm142_vm0, %v3576_v54, 0.0 }
 0x639   :  { %1761 = vadd.xlane.f32.xlu1 %v1760_v55 }
 0x64a   :  { %2025 = vrot.lane.b32.xlu1 %v3506_v43, %s3227_s10 }
 0x64b   :  { %1948 = vrot.lane.b32.xlu0 %v3502_v41, %s3227_s10 }
 0x64e   :  { %v1756_v59 = vpop.xlane.xlu1 %1755  ;;  %2103 = vrot.lane.b32.xlu1 %v3502_v41, %s3228_s11 }
 0x64f   :  { %3169 = vrcp.f32 %v1756_v59  ;;  %v1753_v60 = vpop.xlane.xlu0 %1752 }
 0x650   :  { %3171 = vrcp.f32 %v1753_v60 }
 0x651   :  { %3173 = vpow2.f32 %v1743_v62  ;;  %v2553_v62 = vld [vmem:[%s3731_s3 + $0x10] sm:$0xff] }
 0x652   :  { %2179 = vrot.lane.b32.xlu1 %v3506_v43, %s3228_s11  ;;  %3175 = vpow2.f32 %v1747_v5 }
 0x653   :  { %3177 = vpow2.f32 %v1745_v7 }
 0x654   :  { %3179 = vpow2.f32 %v1749_v10 }
 0x659   :  { %v3170_v0 = vpop.eup %3169 }
 0x65a   :  { %v3172_v1 = vpop.eup %3171  ;;  %v1778_v2 = vmul.f32 %v3170_v0, %v3162_v39  ;;  %v2554_v0 = vld [vmem:[%s3731_s3 + $0x18] sm:$0xff] }
 0x65b   :  { %v1776_v4 = vmul.f32 %v3172_v1, %v3164_v42  ;;  %v3174_v9 = vpop.eup %3173  ;;  %v3054_v1 = vpack.c.bf16 %v2554_v0, %v2553_v62 }
 0x65c   :  { %1792 = vst.msk [vmem:[%s3735_s7 + $0x8] sm:$0xff] %vm142_vm0, %v1778_v2  ;;  %2956 = vmatmul.mubr.msk.f32.vlgmr.msra.gmra.mrb[16].mxu0 %vm142_vm0, %v1778_v2  ;;  %v1763_v11 = vsel %vm142_vm0, %v3174_v9, 0.0  ;;  %v3176_v12 = vpop.eup %3175  ;;  %v2556_v2 = vld [vmem:[%s3731_s3 + $0x28] sm:$0xff] }
 0x65d   :  { %1791 = vst.msk [vmem:[%s3735_s7] sm:$0xff] %vm142_vm0, %v1776_v4  ;;  %2951 = vmatmul.mubr.msk.f32.vlgmr.msra.gmra.mrb[12].mxu1 %vm142_vm0, %v1776_v4  ;;  %2965 = vmatprep.mubr.msk.f32.mxu0 %vm3226_vm2, %v3225_v34  ;;  %v1769_v13 = vsel %vm142_vm0, %v3176_v12, 0.0  ;;  %v3178_v16 = vpop.eup %3177 }
 0x65e   :  { %2960 = vmatprep.mubr.msk.f32.mxu1 %vm3226_vm2, %v3225_v34  ;;  %v1766_v17 = vsel %vm142_vm0, %v3178_v16, 0.0  ;;  %v3180_v18 = vpop.eup %3179 }
 0x65f   :  { %v1772_v15 = vsel %vm142_vm0, %v3180_v18, 0.0 }
 0x66a   :  { %1764 = vadd.xlane.f32.xlu0 %v1763_v11 }
 0x66e   :  { %1770 = vadd.xlane.f32.xlu0 %v1769_v13 }
 0x676   :  { %1767 = vadd.xlane.f32.xlu1 %v1766_v17 }
 0x67a   :  { %1773 = vadd.xlane.f32.xlu1 %v1772_v15 }
 0x684   :  { %2257 = vrot.lane.b32.xlu0 %v3502_v41, %s3229_s12 }
 0x68b   :  { %2333 = vrot.lane.b32.xlu1 %v3506_v43, %s3229_s12 }
 0x6c2   :  { %v1759_v19 = vpop.xlane.xlu0 %1758 }
 0x6c3   :  { %3181 = vrcp.f32 %v1759_v19 }
 0x6c6   :  { %v1762_v20 = vpop.xlane.xlu1 %1761  ;;  %v1949_v21 = vpop.permute.xlu0 %1948 }
 0x6c7   :  { %3183 = vrcp.f32 %v1762_v20  ;;  %2959 = vmatpush3.msra.mxu1 %v1949_v21 }
 0x6c8   :  { %2968 = vmatprep.subr.mxu1 %v3225_v34 }
 0x6ca   :  { %v2026_v22 = vpop.permute.xlu1 %2025 }
 0x6cb   :  { %2964 = vmatpush3.msra.mxu0 %v2026_v22  ;;  %v2760_v22 = vld [vmem:[%s3732_s4 + $0x4] ss:$0 sm:$0xff] }
 0x6cc   :  { %2973 = vmatprep.subr.mxu0 %v3225_v34 }
 0x6cd   :  { %v3182_v23 = vpop.eup %3181 }
 0x6ce   :  { %v1780_v24 = vmul.f32 %v3182_v23, %v3572_v52  ;;  %v2104_v25 = vpop.permute.xlu1 %2103 }
 0x6d0   :  { %1793 = vst.msk [vmem:[%s3735_s7 + $0x10] sm:$0xff] %vm142_vm0, %v1780_v24  ;;  %2961 = vmatmul.mubr.msk.f32.vlgmr.msra.gmra.mrb[12].mxu1 %vm142_vm0, %v1780_v24 }
 0x6d1   :  { %v3184_v41 = vpop.eup %3183  ;;  %2969 = vmatpush3.msra.mxu1 %v2104_v25  ;;  %2970 = vmatprep.mubr.msk.f32.mxu1 %vm3226_vm2, %v3225_v34 }
 0x6d2   :  { %v1782_v43 = vmul.f32 %v3184_v41, %v3576_v54  ;;  %v2180_v27 = vpop.permute.xlu1 %2179  ;;  %2978 = vmatprep.subr.mxu1 %v3225_v34  ;;  %v2761_v41 = vld [vmem:[%s3732_s4 + $0x5] ss:$0 sm:$0xff] }
 0x6d4   :  { %1794 = vst.msk [vmem:[%s3735_s7 + $0x18] sm:$0xff] %vm142_vm0, %v1782_v43  ;;  %2966 = vmatmul.mubr.msk.f32.vlgmr.msra.gmra.mrb[16].mxu0 %vm142_vm0, %v1782_v43 }
 0x6d5   :  { %2974 = vmatpush3.msra.mxu0 %v2180_v27  ;;  %2975 = vmatprep.mubr.msk.f32.mxu0 %vm3226_vm2, %v3225_v34 }
 0x6d6   :  { %2983 = vmatprep.subr.mxu0 %v3225_v34 }
 0x6f7   :  { %v1765_v28 = vpop.xlane.xlu0 %1764 }
 0x6f8   :  { %3185 = vrcp.f32 %v1765_v28 }
 0x6fb   :  { %v1771_v29 = vpop.xlane.xlu0 %1770 }
 0x6fc   :  { %3187 = vrcp.f32 %v1771_v29  ;;  %v2557_v29 = vld [vmem:[%s3731_s3 + $0x30] sm:$0xff] }
 0x6ff   :  { %v2258_v33 = vpop.permute.xlu0 %2257 }
 0x702   :  { %v3186_v30 = vpop.eup %3185 }
 0x703   :  { %v1784_v31 = vmul.f32 %v3186_v30, %v3174_v9  ;;  %v1768_v32 = vpop.xlane.xlu1 %1767  ;;  %v2558_v30 = vld [vmem:[%s3731_s3 + $0x38] sm:$0xff] }
 0x704   :  { %3189 = vrcp.f32 %v1768_v32  ;;  %v2762_v32 = vld [vmem:[%s3732_s4] ss:$0 sm:$0xff] }
 0x705   :  { %1795 = vst.msk [vmem:[%s3735_s7 + $0x20] sm:$0xff] %vm142_vm0, %v1784_v31  ;;  %2971 = vmatmul.mubr.msk.f32.vlgmr.msra.gmra.mrb[12].mxu1 %vm142_vm0, %v1784_v31  ;;  %v3062_v31 = vpack.c.bf16 %v2558_v30, %v2557_v29 }
 0x706   :  { %v3188_v35 = vpop.eup %3187  ;;  %2979 = vmatpush3.msra.mxu1 %v2258_v33  ;;  %2980 = vmatprep.mubr.msk.f32.mxu1 %vm3226_vm2, %v3225_v34 }
 0x707   :  { %v1788_v36 = vmul.f32 %v3188_v35, %v3176_v12  ;;  %v1774_v37 = vpop.xlane.xlu1 %1773 }
 0x708   :  { %3191 = vrcp.f32 %v1774_v37 }
 0x709   :  { %1797 = vst.msk [vmem:[%s3735_s7 + $0x30] sm:$0xff] %vm142_vm0, %v1788_v36 }
 0x70b   :  { %v2334_v44 = vpop.permute.xlu1 %2333 }
 0x70d   :  { %2981 = vmatmul.mubr.msk.f32.vlgmr.msra.gmra.mrb[12].mxu1 %vm142_vm0, %v1788_v36 }
 0x70e   :  { %v3190_v39 = vpop.eup %3189 }
 0x70f   :  { %v1786_v42 = vmul.f32 %v3190_v39, %v3178_v16 }
 0x711   :  { %1796 = vst.msk [vmem:[%s3735_s7 + $0x28] sm:$0xff] %vm142_vm0, %v1786_v42  ;;  %2976 = vmatmul.mubr.msk.f32.vlgmr.msra.gmra.mrb[16].mxu0 %vm142_vm0, %v1786_v42 }
 0x712   :  { %v3192_v45 = vpop.eup %3191  ;;  %2984 = vmatpush3.msra.mxu0 %v2334_v44  ;;  %2985 = vmatprep.mubr.msk.f32.mxu0 %vm3226_vm2, %v3225_v34  ;;  %v2765_v44 = vld [vmem:[%s3732_s4 + $0x1] ss:$0 sm:$0xff] }
 0x713   :  { %v1790_v46 = vmul.f32 %v3192_v45, %v3180_v18 }
 0x715   :  { %1798 = vst.msk [vmem:[%s3735_s7 + $0x38] sm:$0xff] %vm142_vm0, %v1790_v46  ;;  %s2695_s7 = sshll.u32 %s3233_s0, 4  ;;  %s2696_s7 = int_to_ptr.vmem [resolvable:$true] %s2695_s7 }
 0x716   :  { %s3201_s2 = scalar_lea.vmem %s2696_s7, 256  ;;  %p3206_p1 = scmp.lt.s32.totalorder %s2696_s7, %s2696_s7 }
 0x717   :  { %p3202_p0 = scmp.ne.s32.totalorder %s2696_s7, %s3201_s2  ;;  %p3207_p2 = scmp.lt.s32.totalorder %s3201_s2, %s3201_s2 }
 0x719   :  { %2986 = vmatmul.mubr.msk.f32.vlgmr.msra.gmra.mrb[16].mxu0 %vm142_vm0, %v1790_v46  ;;  %p3208_p3 = por %p3207_p2, %p3206_p1 }
 0x71b   :  { %p3209_p4 = pnand %p3208_p3, %p3202_p0 }
 0x7e0   :  { %v2329_v47 = vpop.f32.mrb[12].mxu1 }
 0x7e1   :  { %v3068_v48 = vadd.f32 %v2329_v47, %v3492_v38  ;;  %v2982_v49 = vpop.f32.mrb[13].mxu1 }
 0x7e3   :  { %v2413_v50 = vsel %vm41_vm1, %v3068_v48, 0.0 }
 0x7e4   :  { %2414 = vadd.xlane.f32.xlu0 %v2413_v50 }
 0x7ec   :  { %v2405_v51 = vpop.f32.mrb[16].mxu0 }
 0x7ed   :  { %v3069_v52 = vadd.f32 %v2405_v51, %v3496_v40  ;;  %v2987_v53 = vpop.f32.mrb[17].mxu0 }
 0x7ef   :  { %v2416_v34 = vsel %vm41_vm1, %v3069_v52, 0.0 }
 0x7f0   :  { %2417 = vadd.xlane.f32.xlu1 %v2416_v34 }
 0x801   :  { %3121 = vrot.lane.b32.xlu1 %v3448_v14, %s3228_s11  ;;  %v2551_v14 = vld [vmem:[%s3731_s3] sm:$0xff] }
 0x802   :  { %v3050_v63 = vpack.c.bf16 %v2552_v61, %v2551_v14 }
 0x804   :  { %3051 = vmatprep.subr.bf16.mxu0 %v3050_v63 }
 0x805   :  { %3053 = vmatpush3.bf16.msra.mxu0 %v3050_v63 }
 0x806   :  { %3055 = vmatprep.subr.bf16.mxu0 %v3054_v1 }
 0x809   :  { %3057 = vmatpush3.bf16.msra.mxu0 %v3054_v1  ;;  %v2768_v1 = vld [vmem:[%s3732_s4 + $0x6] ss:$0 sm:$0xff] }
 0x871   :  { %v2415_v54 = vpop.xlane.xlu0 %2414 }
 0x872   :  { %v2419_v55 = vmul.f32 0.03125, %v2415_v54 }
 0x874   :  { %v2421_v26 = vsub.f32 %v3068_v48, %v2419_v55 }
 0x876   :  { %v2423_v60 = vmul.f32 %v2421_v26, %v2421_v26 }
 0x878   :  { %v2425_v40 = vsel %vm41_vm1, %v2423_v60, 0.0 }
 0x87d   :  { %v2418_v56 = vpop.xlane.xlu1 %2417 }
 0x87e   :  { %v2420_v57 = vmul.f32 0.03125, %v2418_v56 }
 0x880   :  { %v2422_v38 = vsub.f32 %v3069_v52, %v2420_v57 }
 0x881   :  { %v3122_v9 = vpop.permute.xlu1 %3121 }
 0x882   :  { %v2424_v58 = vmul.f32 %v2422_v38, %v2422_v38  ;;  %v3124_v12 = vunpack.i.h.bf16 %v3122_v9  ;;  %v3123_v13 = vunpack.i.l.bf16 %v3122_v9 }
 0x884   :  { %v2428_v59 = vsel %vm41_vm1, %v2424_v58, 0.0  ;;  %v3046_v19 = vpack.c.bf16 %v3124_v12, %v3123_v13 }
 0x885   :  { %2429 = vadd.xlane.f32.xlu0 %v2428_v59 }
 0x889   :  { %2426 = vadd.xlane.f32.xlu0 %v2425_v40 }
 0x89f   :  { %3116 = vrot.lane.b32.xlu0 %v3460_v3, %s3228_s11  ;;  %v2555_v3 = vld [vmem:[%s3731_s3 + $0x20] sm:$0xff] }
 0x8a0   :  { %v3058_v4 = vpack.c.bf16 %v2556_v2, %v2555_v3 }
 0x8a2   :  { %3059 = vmatprep.subr.bf16.mxu0 %v3058_v4 }
 0x8a3   :  { %3061 = vmatpush3.bf16.msra.mxu0 %v3058_v4 }
 0x8a4   :  { %3063 = vmatprep.subr.bf16.mxu0 %v3062_v31 }
 0x8a7   :  { %3065 = vmatpush3.bf16.msra.mxu0 %v3062_v31 }
 0x912   :  { %v2430_v5 = vpop.xlane.xlu0 %2429 }
 0x913   :  { %v2432_v6 = vmul.f32 0.03125, %v2430_v5  ;;  %v2769_v5 = vld [vmem:[%s3732_s4 + $0x7] ss:$0 sm:$0xff] }
 0x915   :  { %v2434_v7 = vadd.f32 1e-06, %v2432_v6 }
 0x916   :  { %v2427_v8 = vpop.xlane.xlu0 %2426 }
 0x917   :  { %3193 = vrsqrt.f32 %v2434_v7  ;;  %v2431_v10 = vmul.f32 0.03125, %v2427_v8 }
 0x919   :  { %v2433_v11 = vadd.f32 1e-06, %v2431_v10 }
 0x91a   :  { %v3117_v16 = vpop.permute.xlu0 %3116 }
 0x91b   :  { %3195 = vrsqrt.f32 %v2433_v11  ;;  %v3119_v17 = vunpack.i.h.bf16 %v3117_v16  ;;  %v3118_v18 = vunpack.i.l.bf16 %v3117_v16 }
 0x91d   :  { %v3042_v15 = vpack.c.bf16 %v3119_v17, %v3118_v18 }
 0x91f   :  { %3043 = vmatprep.subr.bf16.mxu1 %v3042_v15 }
 0x920   :  { %3045 = vmatpush3.bf16.msra.mxu1 %v3042_v15 }
 0x921   :  { %v3194_v20 = vpop.eup %3193  ;;  %3047 = vmatprep.subr.bf16.mxu1 %v3046_v19 }
 0x922   :  { %v2438_v21 = vmul.f32 %v3194_v20, %v2422_v38 }
 0x924   :  { %3049 = vmatpush3.bf16.msra.mxu1 %v3046_v19  ;;  %v2444_v25 = vmul.f32 %v2760_v22, %v2438_v21 }
 0x925   :  { %v3196_v23 = vpop.eup %3195 }
 0x926   :  { %v2437_v24 = vmul.f32 %v3196_v23, %v2421_v26  ;;  %v2450_v28 = vadd.f32 %v2761_v41, %v2444_v25 }
 0x928   :  { %v2443_v43 = vmul.f32 %v2760_v22, %v2437_v24 }
 0x92a   :  { %v2449_v27 = vadd.f32 %v2761_v41, %v2443_v43 }
 0x92c   :  { %2996 = vmatprep.mubr.msk.f32.mxu1 %vm41_vm1, %v2449_v27 }
 0x92d   :  { %2997 = vmatmul.mubr.msk.f32.vlgmr.msra.gmra.mrb[14].mxu1 %vm41_vm1, %v2450_v28 }
 0xa00   :  { %v2998_v33 = vpop.f32.mrb[14].mxu1 }
 0xa01   :  { %v2546_v35 = vadd.f32 %v2998_v33, %v2762_v32  ;;  %v2540_v36 = vpop.f32.mrb[15].mxu1 }
 0xa02   :  { %v2541_v37 = vadd.f32 %v2762_v32, %v2540_v36 }
 0xa03   :  { %v2550_v42 = vmax.f32 %v2546_v35, 0.0 }
 0xa04   :  { %v2549_v39 = vmax.f32 %v2541_v37, 0.0 }
 0xa06   :  { %3015 = vmatprep.mubr.msk.f32.mxu0 %vm2564_vm3, %v2549_v39 }
 0xa07   :  { %3016 = vmatmul.mubr.msk.f32.vlgmr.msra.gmra.mrb[18].mxu0 %vm2564_vm3, %v2550_v42 }
 0xada   :  { %v3017_v45 = vpop.f32.mrb[18].mxu0 }
 0xadb   :  { %v2643_v46 = vadd.f32 %v3017_v45, %v2765_v44  ;;  %v2637_v47 = vpop.f32.mrb[19].mxu0 }
 0xadc   :  { %v2638_v48 = vadd.f32 %v2765_v44, %v2637_v47 }
 0xadd   :  { %v2647_v49 = vadd.f32 %v2643_v46, %v2450_v28 }
 0xade   :  { %v2646_v50 = vadd.f32 %v2638_v48, %v2449_v27 }
 0xadf   :  { %v2653_v51 = vsel %vm41_vm1, %v2647_v49, 0.0 }
 0xae0   :  { %2654 = vadd.xlane.f32.xlu0 %v2653_v51  ;;  %v2650_v52 = vsel %vm41_vm1, %v2646_v50, 0.0 }
 0xae1   :  { %2651 = vadd.xlane.f32.xlu1 %v2650_v52 }
 0xb6d   :  { %v2655_v53 = vpop.xlane.xlu0 %2654 }
 0xb6e   :  { %v2657_v34 = vmul.f32 0.03125, %v2655_v53  ;;  %v2652_v54 = vpop.xlane.xlu1 %2651 }
 0xb6f   :  { %v2656_v55 = vmul.f32 0.03125, %v2652_v54 }
 0xb70   :  { %v2659_v56 = vsub.f32 %v2647_v49, %v2657_v34 }
 0xb71   :  { %v2658_v57 = vsub.f32 %v2646_v50, %v2656_v55 }
 0xb72   :  { %v2661_v26 = vmul.f32 %v2659_v56, %v2659_v56 }
 0xb73   :  { %v2660_v38 = vmul.f32 %v2658_v57, %v2658_v57 }
 0xb74   :  { %v2665_v58 = vsel %vm41_vm1, %v2661_v26, 0.0 }
 0xb75   :  { %2666 = vadd.xlane.f32.xlu1 %v2665_v58  ;;  %v2662_v59 = vsel %vm41_vm1, %v2660_v38, 0.0 }
 0xb76   :  { %2663 = vadd.xlane.f32.xlu0 %v2662_v59 }
 0xc02   :  { %v2667_v60 = vpop.xlane.xlu1 %2666 }
 0xc03   :  { %v2669_v40 = vmul.f32 0.03125, %v2667_v60  ;;  %v2664_v14 = vpop.xlane.xlu0 %2663 }
 0xc04   :  { %v2668_v61 = vmul.f32 0.03125, %v2664_v14 }
 0xc05   :  { %v2671_v62 = vadd.f32 1e-06, %v2669_v40 }
 0xc06   :  { %v2670_v63 = vadd.f32 1e-06, %v2668_v61 }
 0xc07   :  { %3197 = vrsqrt.f32 %v2671_v62 }
 0xc08   :  { %3199 = vrsqrt.f32 %v2670_v63 }
 0xc11   :  { %v3198_v0 = vpop.eup %3197 }
 0xc12   :  { %v3200_v3 = vpop.eup %3199  ;;  %v2675_v2 = vmul.f32 %v3198_v0, %v2659_v56 }
 0xc13   :  { %v2674_v4 = vmul.f32 %v3200_v3, %v2658_v57 }
 0xc14   :  { %v2681_v6 = vmul.f32 %v2768_v1, %v2675_v2 }
 0xc15   :  { %v2680_v7 = vmul.f32 %v2768_v1, %v2674_v4 }
 0xc16   :  { %v2687_v8 = vadd.f32 %v2769_v5, %v2681_v6 }
 0xc17   :  { %v2686_v9 = vadd.f32 %v2769_v5, %v2680_v7 }
 0xc18   :  { %2689 = vst.msk [vmem:[#allocation2 + $0x8] sm:$0xff] %vm41_vm1, %v2687_v8 }
 0xc19   :  { %2688 = vst.msk [vmem:[#allocation2] sm:$0xff] %vm41_vm1, %v2686_v9 }
 0xc1a   :  { %3212 = shalt.err (!%p3209_p4)
}
 0xc1b   :  { %s3213_s6 = scalar_lea.hbm %s3733_s5, 256 }
 0xc1c   :  { %p3214_p5 = scmp.ne.s32.totalorder %s3733_s5, %s3213_s6  ;;  %p3217_p6 = scmp.lt.u32.totalorder %s3213_s6, %s3733_s5 }
 0xc1e   :  { %p3219_p7 = pnand %p3217_p6, %p3214_p5 }
 0xc20   :  { %3222 = shalt.err (!%p3219_p7)
}
 0xc21   :  { %s3234_s13 = smov 128   ;;  %s3235_s11 = smov 8  }
 0xc22   :  { %2701 = dma.vmem_to_hbm [thread:$0]  %s2696_s7, 256, %s3733_s5, [#allocation3], %s3234_s13, %s3234_s13, %s3235_s11  }
 0xc23   :  { %3223 = dma.done.wait [#allocation3], 256  }
 0xc24   :  { %3224 = vsyncadd [#allocation3], 4294967040 }
 0xc25   :  { %2713 = vsyncpa [#allocation3], 1 }

</bundles_post_ra>
